<compile_context>
chip_gen: v5e
topology: v5e:2x2
jax: 0.10.0
libtpu: 0.0.40
codegen_flags: <defaults>
</compile_context>

<pallas_src>
import functools
import math

import jax
import jax.numpy as jnp
from jax.experimental import pallas as pl
from jax.experimental.pallas import tpu as pltpu


LATENT_DIM = 10          # opt.latent_dim default in the AAE script
H1 = 512
H2 = 256
NEG_SLOPE = 0.2
MAX_TILE_B = 1024        # review: 1024-2048; 1024 keeps activations well inside
                         # even v5e's 16 MiB scoped-VMEM default


def _round_up(x, m):
    return ((x + m - 1) // m) * m


def _cdiv(a, b):
    return -(-a // b)


def _vpu_has_bf16():
    """True on TPU generations with a packed-bf16 VPU datapath (v6e / v7x)."""
    try:
        kind = jax.devices()[0].device_kind.lower()
    except Exception:
        return False
    if "tpu" not in kind:
        return False
    return not any(t in kind for t in ("v2", "v3", "v4", "v5"))


def _pick_grid(batch, max_tile_b):
    """Balanced batch tiling (avoids a mostly-padding last tile)."""
    n_tiles = max(1, _cdiv(batch, max_tile_b))
    # Keep >= 2 grid steps once the batch is big enough so the "parallel" axis
    # can shard across both v7x TensorCores (and >= 8 steps for large batches
    # so the pipeline always has work in flight).
    if batch >= 512:
        n_tiles = max(n_tiles, 2)
    if batch >= 8 * 1024:
        n_tiles = max(n_tiles, 8)
    if n_tiles == 1:
        tile_b = _round_up(batch, 8)            # block == full array: any size OK
    else:
        # Multi-tile: the batch is the lane axis, so tiles must be 128-aligned.
        tile_b = _round_up(_cdiv(batch, n_tiles), 128)
        n_tiles = _cdiv(batch, tile_b)          # drop tiles made redundant by rounding
    return tile_b, n_tiles


def _discriminator_kernel(z_ref, w1_ref, b1_ref, w2_ref, b2_ref, w3_ref, b3_ref,
                          out_ref, *, bf16_epilogue):
    # Layer 1: (H1, D) @ (D, T) on the MXU; bf16 operands, f32 accumulation.
    zt = z_ref[...].astype(jnp.bfloat16)
    acc1 = jnp.dot(w1_ref[...], zt, preferred_element_type=jnp.float32)
    if bf16_epilogue:
        # v6e / v7x: packed-bf16 VPU -> half the vregs / VALU ops, no extra cast.
        h = acc1.astype(jnp.bfloat16) + b1_ref[...].astype(jnp.bfloat16)
        h = jnp.maximum(h, NEG_SLOPE * h)       # LeakyReLU(0.2), bf16
    else:
        # v5e (no bf16 VPU): keep the elementwise pass in f32.
        h = acc1 + b1_ref[...]
        h = jnp.maximum(h, NEG_SLOPE * h)       # LeakyReLU(0.2), f32
        h = h.astype(jnp.bfloat16)

    # Layer 2: (H2, H1) @ (H1, T) on the MXU; bf16 operands, f32 accumulation.
    h2 = jnp.dot(w2_ref[...], h, preferred_element_type=jnp.float32)
    h2 = h2 + b2_ref[...]
    h2 = jnp.maximum(h2, NEG_SLOPE * h2)        # LeakyReLU(0.2), f32

    # Layer 3 (out_features = 1): VPU multiply + cross-sublane reduction gives a
    # lane-dense (1, T) logit row directly (no relayout, MXU stays free).
    logit = jnp.sum(h2 * w3_ref[...], axis=0, keepdims=True) + b3_ref[...]

    # Sigmoid: exp on the EUP, approx reciprocal also on the EUP.
    out_ref[...] = pl.reciprocal(1.0 + jnp.exp(-logit),
                                 approx=True).astype(out_ref.dtype)


def _resident(shape):
    # Constant index_map -> block stays VMEM-resident across the whole grid.
    return pl.BlockSpec(shape, lambda i: (0, 0))


def discriminator_forward(z, params, *, max_tile_b=MAX_TILE_B):
    """z: (B, latent_dim) float32 -> validity (B, 1) float32."""
    w1, b1, w2, b2, w3, b3 = params
    B, D = z.shape

    tile_b, n_tiles = _pick_grid(B, max_tile_b)
    b_pad = tile_b * n_tiles

    zt = z.T                                    # (D, B): tiny transpose done by XLA
    if b_pad != B:
        zt = jnp.pad(zt, ((0, 0), (0, b_pad - B)))

    kernel = functools.partial(_discriminator_kernel,
                               bf16_epilogue=_vpu_has_bf16())

    out = pl.pallas_call(
        kernel,
        out_shape=jax.ShapeDtypeStruct((1, b_pad), jnp.float32),
        grid=(n_tiles,),
        in_specs=[
            pl.BlockSpec((D, tile_b), lambda i: (0, i)),   # z tile (lane = batch)
            _resident(w1.shape),                           # (H1, D)  bf16
            _resident(b1.shape),                           # (H1, 1)  f32
            _resident(w2.shape),                           # (H2, H1) bf16
            _resident(b2.shape),                           # (H2, 1)  f32
            _resident(w3.shape),                           # (H2, 1)  f32
            _resident(b3.shape),                           # (1, 1)   f32
        ],
        out_specs=pl.BlockSpec((1, tile_b), lambda i: (0, i)),   # lane-dense row
        compiler_params=pltpu.CompilerParams(
            # Megacore sharding of the batch axis (v7x).  If a trace ever shows
            # plain "parallel" not splitting across cores, switch this axis to
            # pltpu.CORE_PARALLEL.
            dimension_semantics=("parallel",),
        ),
    )(zt, w1, b1, w2, b2, w3, b3)

    return out[0, :B].reshape(B, 1)


def init_params(key, latent_dim=LATENT_DIM):
    """Mirror torch.nn.Linear init: U(-1/sqrt(fan_in), 1/sqrt(fan_in)).

    Weights are stored in PyTorch's (out_features, in_features) layout (bf16 for
    the two MXU layers); biases as (out_features, 1) f32 columns; the last
    layer's (1, 256) weight as a (256, 1) f32 column for the sublane reduction.
    """
    def uniform(k, shape, fan_in):
        bound = 1.0 / math.sqrt(fan_in)
        return jax.random.uniform(k, shape, jnp.float32, -bound, bound)

    ks = jax.random.split(key, 6)
    w1 = uniform(ks[0], (H1, latent_dim), latent_dim).astype(jnp.bfloat16)
    b1 = uniform(ks[1], (H1, 1), latent_dim)
    w2 = uniform(ks[2], (H2, H1), H1).astype(jnp.bfloat16)
    b2 = uniform(ks[3], (H2, 1), H1)
    w3 = uniform(ks[4], (H2, 1), H2)
    b3 = uniform(ks[5], (1, 1), H2)
    return (w1, b1, w2, b2, w3, b3)


def _reference_forward(z, params, *, bf16_epilogue):
    """Pure-JAX reference mirroring the kernel's mixed precision."""
    w1, b1, w2, b2, w3, b3 = params
    zt = z.T.astype(jnp.bfloat16)
    acc1 = jnp.dot(w1, zt, preferred_element_type=jnp.float32)
    if bf16_epilogue:
        h = acc1.astype(jnp.bfloat16) + b1.astype(jnp.bfloat16)
        h = jnp.maximum(h, NEG_SLOPE * h)
    else:
        h = acc1 + b1
        h = jnp.maximum(h, NEG_SLOPE * h).astype(jnp.bfloat16)
    h2 = jnp.dot(w2, h, preferred_element_type=jnp.float32) + b2
    h2 = jnp.maximum(h2, NEG_SLOPE * h2)
    logit = jnp.sum(h2 * w3, axis=0, keepdims=True) + b3
    return jax.nn.sigmoid(logit).T                     # (B, 1)


if __name__ == "__main__":
    key = jax.random.PRNGKey(0)
    k_params, k_z = jax.random.split(key)
    params = init_params(k_params)
    use_bf16 = _vpu_has_bf16()

    # Small single-tile batch, deliberately not a multiple of 8 (padding path).
    B = 37
    z = jax.random.normal(k_z, (B, LATENT_DIM), jnp.float32)
    validity = jax.block_until_ready(discriminator_forward(z, params))
    ref = _reference_forward(z, params, bf16_epilogue=use_bf16)
    assert validity.shape == (B, 1)
    assert jnp.allclose(validity, ref, atol=1e-2, rtol=1e-2), \
        float(jnp.max(jnp.abs(validity - ref)))

    # Multi-tile path (balanced, 128-aligned tiles + lane-dense tiled stores).
    B2 = 300
    z2 = jax.random.normal(k_z, (B2, LATENT_DIM), jnp.float32)
    v2 = jax.block_until_ready(discriminator_forward(z2, params, max_tile_b=128))
    ref2 = _reference_forward(z2, params, bf16_epilogue=use_bf16)
    assert v2.shape == (B2, 1)
    assert jnp.allclose(v2, ref2, atol=1e-2, rtol=1e-2), \
        float(jnp.max(jnp.abs(v2 - ref2)))

    print("KERNEL_OK")
</pallas_src>

<mosaic_0001>
module attributes {stable_mosaic.version = 11 : i64} {
  func.func @_discriminator_kernel(%arg0: i32, %arg1: memref<10x40xf32, #tpu.memory_space<vmem>>, %arg2: memref<512x10xbf16, #tpu.memory_space<vmem>>, %arg3: memref<512x1xf32, #tpu.memory_space<vmem>>, %arg4: memref<256x512xbf16, #tpu.memory_space<vmem>>, %arg5: memref<256x1xf32, #tpu.memory_space<vmem>>, %arg6: memref<256x1xf32, #tpu.memory_space<vmem>>, %arg7: memref<1x1xf32, #tpu.memory_space<vmem>>, %arg8: memref<1x40xf32, #tpu.memory_space<vmem>>) attributes {dimension_semantics = [#tpu.dimension_semantics<parallel>], iteration_bounds = array<i64: 1>, scalar_prefetch = 0 : i64, scratch_operands = 0 : i64, tpu.core_type = #tpu.core_type<tc>, window_params = [{transform_indices = @transform_0, window_bounds = array<i64: 10, 40>}, {pipeline_mode = #tpu.pipeline_mode<synchronous>, transform_indices = @transform_1, window_bounds = array<i64: 512, 10>}, {pipeline_mode = #tpu.pipeline_mode<synchronous>, transform_indices = @transform_2, window_bounds = array<i64: 512, 1>}, {pipeline_mode = #tpu.pipeline_mode<synchronous>, transform_indices = @transform_3, window_bounds = array<i64: 256, 512>}, {pipeline_mode = #tpu.pipeline_mode<synchronous>, transform_indices = @transform_4, window_bounds = array<i64: 256, 1>}, {pipeline_mode = #tpu.pipeline_mode<synchronous>, transform_indices = @transform_5, window_bounds = array<i64: 256, 1>}, {pipeline_mode = #tpu.pipeline_mode<synchronous>, transform_indices = @transform_6, window_bounds = array<i64: 1, 1>}, {transform_indices = @transform_7, window_bounds = array<i64: 1, 40>}]} {
    %c0 = arith.constant 0 : index
    %c0_0 = arith.constant 0 : index
    %0 = vector.load %arg1[%c0, %c0_0] : memref<10x40xf32, #tpu.memory_space<vmem>>, vector<10x40xf32>
    %1 = arith.truncf %0 : vector<10x40xf32> to vector<10x40xbf16>
    %c0_1 = arith.constant 0 : index
    %c0_2 = arith.constant 0 : index
    %2 = vector.load %arg2[%c0_1, %c0_2] : memref<512x10xbf16, #tpu.memory_space<vmem>>, vector<512x10xbf16>
    %cst = arith.constant dense<0.000000e+00> : vector<512x40xf32>
    %3 = tpu.matmul %2, %1, %cst {dimension_numbers = #tpu.dot_dimension_numbers<[1], [0], [0], [1], [0, 0, 1, 1], [], []>} : vector<512x10xbf16>, vector<10x40xbf16>, vector<512x40xf32> -> vector<512x40xf32>
    %c0_3 = arith.constant 0 : index
    %c0_4 = arith.constant 0 : index
    %4 = vector.load %arg3[%c0_3, %c0_4] : memref<512x1xf32, #tpu.memory_space<vmem>>, vector<512x1xf32>
    %5 = vector.broadcast %4 : vector<512x1xf32> to vector<512x40xf32>
    %6 = arith.addf %3, %5 : vector<512x40xf32>
    %cst_5 = arith.constant 2.000000e-01 : f32
    %7 = vector.broadcast %cst_5 : f32 to vector<512x40xf32>
    %8 = arith.mulf %7, %6 : vector<512x40xf32>
    %9 = arith.maximumf %6, %8 : vector<512x40xf32>
    %10 = arith.truncf %9 : vector<512x40xf32> to vector<512x40xbf16>
    %c0_6 = arith.constant 0 : index
    %c0_7 = arith.constant 0 : index
    %11 = vector.load %arg4[%c0_6, %c0_7] : memref<256x512xbf16, #tpu.memory_space<vmem>>, vector<256x512xbf16>
    %cst_8 = arith.constant dense<0.000000e+00> : vector<256x40xf32>
    %12 = tpu.matmul %11, %10, %cst_8 {dimension_numbers = #tpu.dot_dimension_numbers<[1], [0], [0], [1], [0, 0, 1, 1], [], []>} : vector<256x512xbf16>, vector<512x40xbf16>, vector<256x40xf32> -> vector<256x40xf32>
    %c0_9 = arith.constant 0 : index
    %c0_10 = arith.constant 0 : index
    %13 = vector.load %arg5[%c0_9, %c0_10] : memref<256x1xf32, #tpu.memory_space<vmem>>, vector<256x1xf32>
    %14 = vector.broadcast %13 : vector<256x1xf32> to vector<256x40xf32>
    %15 = arith.addf %12, %14 : vector<256x40xf32>
    %cst_11 = arith.constant 2.000000e-01 : f32
    %16 = vector.broadcast %cst_11 : f32 to vector<256x40xf32>
    %17 = arith.mulf %16, %15 : vector<256x40xf32>
    %18 = arith.maximumf %15, %17 : vector<256x40xf32>
    %c0_12 = arith.constant 0 : index
    %c0_13 = arith.constant 0 : index
    %19 = vector.load %arg6[%c0_12, %c0_13] : memref<256x1xf32, #tpu.memory_space<vmem>>, vector<256x1xf32>
    %20 = vector.broadcast %19 : vector<256x1xf32> to vector<256x40xf32>
    %21 = arith.mulf %18, %20 : vector<256x40xf32>
    %cst_14 = arith.constant dense<0.000000e+00> : vector<40xf32>
    %22 = vector.multi_reduction <add>, %21, %cst_14 [0] : vector<256x40xf32> to vector<40xf32>
    %23 = vector.shape_cast %22 : vector<40xf32> to vector<1x40xf32>
    %c0_15 = arith.constant 0 : index
    %c0_16 = arith.constant 0 : index
    %24 = vector.load %arg7[%c0_15, %c0_16] : memref<1x1xf32, #tpu.memory_space<vmem>>, vector<1x1xf32>
    %25 = vector.broadcast %24 : vector<1x1xf32> to vector<1x40xf32>
    %26 = arith.addf %23, %25 : vector<1x40xf32>
    %cst_17 = arith.constant 0.000000e+00 : f32
    %27 = vector.broadcast %cst_17 : f32 to vector<1x40xf32>
    %28 = arith.subf %27, %26 : vector<1x40xf32>
    %29 = math.exp %28 : vector<1x40xf32>
    %cst_18 = arith.constant 1.000000e+00 : f32
    %30 = vector.broadcast %cst_18 : f32 to vector<1x40xf32>
    %31 = arith.addf %30, %29 : vector<1x40xf32>
    %32 = tpu.reciprocal %31 {approx = true} : vector<1x40xf32> -> vector<1x40xf32>
    %c0_19 = arith.constant 0 : index
    %c0_20 = arith.constant 0 : index
    %33 = vector.load %arg8[%c0_19, %c0_20] : memref<1x40xf32, #tpu.memory_space<vmem>>, vector<1x40xf32>
    tpu.vector_store %arg8[%c0_19, %c0_20], %32 {strides = array<i32>} : memref<1x40xf32, #tpu.memory_space<vmem>>, vector<1x40xf32>,
    return
  }
  func.func @transform_0(%arg0: i32) -> (i32, i32) {
    %c0_i32 = arith.constant 0 : i32
    %c0_i32_0 = arith.constant 0 : i32
    return %c0_i32, %arg0 : i32, i32
  }
  func.func @transform_1(%arg0: i32) -> (i32, i32) {
    %c0_i32 = arith.constant 0 : i32
    %c0_i32_0 = arith.constant 0 : i32
    %c0_i32_1 = arith.constant 0 : i32
    return %c0_i32, %c0_i32_0 : i32, i32
  }
  func.func @transform_2(%arg0: i32) -> (i32, i32) {
    %c0_i32 = arith.constant 0 : i32
    %c0_i32_0 = arith.constant 0 : i32
    %c0_i32_1 = arith.constant 0 : i32
    return %c0_i32, %c0_i32_0 : i32, i32
  }
  func.func @transform_3(%arg0: i32) -> (i32, i32) {
    %c0_i32 = arith.constant 0 : i32
    %c0_i32_0 = arith.constant 0 : i32
    %c0_i32_1 = arith.constant 0 : i32
    return %c0_i32, %c0_i32_0 : i32, i32
  }
  func.func @transform_4(%arg0: i32) -> (i32, i32) {
    %c0_i32 = arith.constant 0 : i32
    %c0_i32_0 = arith.constant 0 : i32
    %c0_i32_1 = arith.constant 0 : i32
    return %c0_i32, %c0_i32_0 : i32, i32
  }
  func.func @transform_5(%arg0: i32) -> (i32, i32) {
    %c0_i32 = arith.constant 0 : i32
    %c0_i32_0 = arith.constant 0 : i32
    %c0_i32_1 = arith.constant 0 : i32
    return %c0_i32, %c0_i32_0 : i32, i32
  }
  func.func @transform_6(%arg0: i32) -> (i32, i32) {
    %c0_i32 = arith.constant 0 : i32
    %c0_i32_0 = arith.constant 0 : i32
    %c0_i32_1 = arith.constant 0 : i32
    return %c0_i32, %c0_i32_0 : i32, i32
  }
  func.func @transform_7(%arg0: i32) -> (i32, i32) {
    %c0_i32 = arith.constant 0 : i32
    %c0_i32_0 = arith.constant 0 : i32
    return %c0_i32, %arg0 : i32, i32
  }
}

</mosaic_0001>

<bundles_post_ra>
// kernel: tpu_custom_call.1
= control target key start
LH: loop header
LB: loop body
LE: loop exit
PB: predicated region body
PF: predicated region fallthrough
CT: control target
= control target key end

     0   :  { %s4365_s0 = inlined_call_operand.vmem [shape: f32[10,40], index: 0, kind: input, shape index: {}]   ;;  %s4366_s1 = inlined_call_operand.vmem [shape: bf16[512,10], index: 1, kind: input, shape index: {}]   ;;  %s4367_s2 = inlined_call_operand.vmem [shape: f32[512,1], index: 2, kind: input, shape index: {}]   ;;  %s4368_s3 = inlined_call_operand.vmem [shape: bf16[256,512], index: 3, kind: input, shape index: {}]   ;;  %s4369_s4 = inlined_call_operand.vmem [shape: f32[256,1], index: 4, kind: input, shape index: {}]   ;;  %s4370_s5 = inlined_call_operand.vmem [shape: f32[256,1], index: 5, kind: input, shape index: {}]   ;;  %s4371_s6 = inlined_call_operand.<no memory space> [shape: f32[1,1], index: 6, kind: input, shape index: {}]   ;;  %s4372_s7 = inlined_call_operand.hbm [shape: f32[1,40], index: 7, kind: output, shape index: {}]  }
   0x1   :  { %v12_v0 = vstv %s4371_s6 }
   0x2   :  { %13 = vst [vmem:[#allocation2] sm:$0x1] %v12_v0 }
   0x3   :  { %v101_v1 = vld [vmem:[%s4367_s2 + $0x20] sm:$0xff]  ;;  %v99_v2 = vld [vmem:[%s4367_s2 + $0x10] sm:$0xff]  ;;  %v2948_v4 = vmov 0   ;;  %v31_v6 = vld [vmem:[%s4365_s0 + $0x8] sm:$0x3]  ;;  %vm738_vm0 = vcmask 1044480  }
   0x4   :  { %v97_v3 = vld [vmem:[%s4367_s2] sm:$0xff]  ;;  %2917 = vset.pattern.permute.xlu2 %v2948_v4  ;;  %2916 = vset.pattern.permute.xlu1 %v2948_v4  ;;  %vm641_vm1 = vcmask 80896  }
   0x5   :  { %v30_v5 = vld [vmem:[%s4365_s0] sm:$0xff]  ;;  %2915 = vset.pattern.permute.xlu0 %v2948_v4  ;;  %183 = vperm.xlu2 %2917, %v101_v1  }
   0x6   :  { %v32_v7 = vpack.c.bf16 %v31_v6, %v30_v5  ;;  %173 = vperm.xlu1 %2916, %v99_v2   ;;  %163 = vperm.xlu0 %2915, %v97_v3   ;;  %v2808_v9 = vld [vmem:[%s4366_s1] sm:$0xff] }
   0x8   :  { %v740_v8 = vsel %vm738_vm0, %v32_v7, 0 }
   0x9   :  { %749 = vmatpush.bf16.msra.mxu0 %v740_v8  ;;  %2904 = vmatpush.bf16.msra.mxu3 %v740_v8 }
   0xa   :  { %14 = vsyncpa [#allocation4], 0  ;;  %v102_v10 = vld [vmem:[%s4367_s2 + $0x28] sm:$0xff]  ;;  %v100_v11 = vld [vmem:[%s4367_s2 + $0x18] sm:$0xff]  ;;  %vm2291_vm2 = vcmask 326656   ;;  %vm2374_vm3 = vcmask 319488  }
   0xb   :  { %v98_v12 = vld [vmem:[%s4367_s2 + $0x8] sm:$0xff]  ;;  %v105_v13 = vld [vmem:[%s4367_s2 + $0x40] sm:$0xff]  ;;  %v104_v14 = vld [vmem:[%s4367_s2 + $0x38] sm:$0xff] }
   0xc   :  { %2520 = vmatmul.msk.bf16.vlgmr.msra.gmra.mxu0 %vm641_vm1, %v2808_v9  ;;  %v103_v15 = vld [vmem:[%s4367_s2 + $0x30] sm:$0xff]  ;;  %v2809_v16 = vld [vmem:[%s4366_s1 + $0x8] sm:$0xff]  ;;  %v108_v17 = vld [vmem:[%s4367_s2 + $0x58] sm:$0xff] }
   0xd   :  { %188 = vperm.xlu2 %2917, %v102_v10   ;;  %v107_v18 = vld [vmem:[%s4367_s2 + $0x50] sm:$0xff]  ;;  %v106_v19 = vld [vmem:[%s4367_s2 + $0x48] sm:$0xff]  ;;  %v109_v22 = vld [vmem:[%s4367_s2 + $0x60] sm:$0xff] }
   0xe   :  { %178 = vperm.xlu1 %2916, %v100_v11   ;;  %168 = vperm.xlu0 %2915, %v98_v12   ;;  %v111_v20 = vld [vmem:[%s4367_s2 + $0x70] sm:$0xff]  ;;  %v110_v21 = vld [vmem:[%s4367_s2 + $0x68] sm:$0xff]  ;;  %v113_v25 = vld [vmem:[%s4367_s2 + $0x80] sm:$0xff] }
   0xf   :  { %v2810_v23 = vld [vmem:[%s4366_s1 + $0x10] sm:$0xff]  ;;  %v114_v24 = vld [vmem:[%s4367_s2 + $0x88] sm:$0xff]  ;;  %v112_v26 = vld [vmem:[%s4367_s2 + $0x78] sm:$0xff] }
  0x10   :  { %v2833_v27 = vld [vmem:[%s4366_s1 + $0xc8] sm:$0xff]  ;;  %v117_v28 = vld [vmem:[%s4367_s2 + $0xa0] sm:$0xff]  ;;  %v116_v29 = vld [vmem:[%s4367_s2 + $0x98] sm:$0xff] }
  0x11   :  { %2545 = vmatmul.msk.bf16.vlgmr.msra.gmra.mxu3 %vm641_vm1, %v2833_v27  ;;  %v115_v30 = vld [vmem:[%s4367_s2 + $0x90] sm:$0xff]  ;;  %v2811_v31 = vld [vmem:[%s4366_s1 + $0x18] sm:$0xff]  ;;  %v118_v34 = vld [vmem:[%s4367_s2 + $0xa8] sm:$0xff] }
  0x12   :  { %v120_v32 = vld [vmem:[%s4367_s2 + $0xb8] sm:$0xff]  ;;  %v119_v33 = vld [vmem:[%s4367_s2 + $0xb0] sm:$0xff]  ;;  %v122_v37 = vld [vmem:[%s4367_s2 + $0xc8] sm:$0xff] }
  0x13   :  { %v2834_v35 = vld [vmem:[%s4366_s1 + $0xd0] sm:$0xff]  ;;  %v121_v38 = vld [vmem:[%s4367_s2 + $0xc0] sm:$0xff]  ;;  %v126_v40 = vld [vmem:[%s4367_s2 + $0xe8] sm:$0xff] }
  0x14   :  { %v123_v36 = vld [vmem:[%s4367_s2 + $0xd0] sm:$0xff]  ;;  %v2812_v39 = vld [vmem:[%s4366_s1 + $0x20] sm:$0xff]  ;;  %v124_v42 = vld [vmem:[%s4367_s2 + $0xd8] sm:$0xff] }
  0x15   :  { %203 = vperm.xlu2 %2917, %v105_v13   ;;  %v125_v41 = vld [vmem:[%s4367_s2 + $0xe0] sm:$0xff]  ;;  %v2835_v43 = vld [vmem:[%s4366_s1 + $0xd8] sm:$0xff]  ;;  %v127_v46 = vld [vmem:[%s4367_s2 + $0xf0] sm:$0xff] }
  0x16   :  { %198 = vperm.xlu1 %2916, %v104_v14   ;;  %193 = vperm.xlu0 %2915, %v103_v15   ;;  %v129_v44 = vld [vmem:[%s4367_s2 + $0x100] sm:$0xff]  ;;  %v128_v45 = vld [vmem:[%s4367_s2 + $0xf8] sm:$0xff]  ;;  %v2813_v47 = vld [vmem:[%s4366_s1 + $0x28] sm:$0xff] }
  0x17   :  { %v132_v48 = vld [vmem:[%s4367_s2 + $0x118] sm:$0xff]  ;;  %v131_v49 = vld [vmem:[%s4367_s2 + $0x110] sm:$0xff]  ;;  %v130_v50 = vld [vmem:[%s4367_s2 + $0x108] sm:$0xff] }
  0x18   :  { %v2836_v51 = vld [vmem:[%s4366_s1 + $0xe0] sm:$0xff]  ;;  %v135_v52 = vld [vmem:[%s4367_s2 + $0x130] sm:$0xff]  ;;  %v134_v53 = vld [vmem:[%s4367_s2 + $0x128] sm:$0xff] }
  0x19   :  { %v133_v54 = vld [vmem:[%s4367_s2 + $0x120] sm:$0xff]  ;;  %v2814_v55 = vld [vmem:[%s4366_s1 + $0x30] sm:$0xff]  ;;  %v138_v56 = vld [vmem:[%s4367_s2 + $0x148] sm:$0xff] }
  0x1a   :  { %v137_v58 = vld [vmem:[%s4367_s2 + $0x140] sm:$0xff]  ;;  %v136_v59 = vld [vmem:[%s4367_s2 + $0x138] sm:$0xff]  ;;  %v2837_v60 = vld [vmem:[%s4366_s1 + $0xe8] sm:$0xff] }
  0x1b   :  { %v141_v61 = vld [vmem:[%s4367_s2 + $0x160] sm:$0xff]  ;;  %v140_v62 = vld [vmem:[%s4367_s2 + $0x158] sm:$0xff]  ;;  %v139_v63 = vld [vmem:[%s4367_s2 + $0x150] sm:$0xff] }
  0x1c   :  { %2521 = vmatmul.msk.bf16.gmra.mxu0 %vm641_vm1, %v2809_v16  ;;  %v2815_v1 = vld [vmem:[%s4366_s1 + $0x38] sm:$0xff]  ;;  %v142_v4 = vld [vmem:[%s4367_s2 + $0x168] sm:$0xff]  ;;  %v143_v6 = vld [vmem:[%s4367_s2 + $0x170] sm:$0xff] }
  0x1d   :  { %218 = vperm.xlu2 %2917, %v108_v17   ;;  %v144_v5 = vld [vmem:[%s4367_s2 + $0x178] sm:$0xff]  ;;  %v2838_v10 = vld [vmem:[%s4366_s1 + $0xf0] sm:$0xff]  ;;  %v157_v11 = vld [vmem:[%s4367_s2 + $0x1e0] sm:$0xff] }
  0x1e   :  { %213 = vperm.xlu1 %2916, %v107_v18   ;;  %208 = vperm.xlu0 %2915, %v106_v19   ;;  %v160_v12 = vld [vmem:[%s4367_s2 + $0x1f8] sm:$0xff]  ;;  %v159_v13 = vld [vmem:[%s4367_s2 + $0x1f0] sm:$0xff]  ;;  %v2816_v14 = vld [vmem:[%s4366_s1 + $0x40] sm:$0xff] }
  0x21   :  { %2546 = vmatmul.msk.bf16.gmra.mxu3 %vm641_vm1, %v2834_v35 }
  0x25   :  { %233 = vperm.xlu2 %2917, %v111_v20   ;;  %v156_v20 = vld [vmem:[%s4367_s2 + $0x1d8] sm:$0xff] }
  0x26   :  { %228 = vperm.xlu1 %2916, %v110_v21   ;;  %223 = vperm.xlu0 %2915, %v109_v22   ;;  %v155_v21 = vld [vmem:[%s4367_s2 + $0x1d0] sm:$0xff]  ;;  %v158_v22 = vld [vmem:[%s4367_s2 + $0x1e8] sm:$0xff] }
  0x2c   :  { %2522 = vmatmul.msk.bf16.gmra.mxu0 %vm641_vm1, %v2810_v23 }
  0x2d   :  { %248 = vperm.xlu2 %2917, %v114_v24  }
  0x2e   :  { %243 = vperm.xlu1 %2916, %v113_v25   ;;  %238 = vperm.xlu0 %2915, %v112_v26   ;;  %v2839_v25 = vld [vmem:[%s4366_s1 + $0xf8] sm:$0xff] }
  0x31   :  { %2547 = vmatmul.msk.bf16.gmra.mxu3 %vm641_vm1, %v2835_v43  ;;  %v149_v43 = vld [vmem:[%s4367_s2 + $0x1a0] sm:$0xff] }
  0x35   :  { %263 = vperm.xlu2 %2917, %v117_v28  }
  0x36   :  { %258 = vperm.xlu1 %2916, %v116_v29   ;;  %253 = vperm.xlu0 %2915, %v115_v30   ;;  %v151_v29 = vld [vmem:[%s4367_s2 + $0x1b0] sm:$0xff] }
  0x3c   :  { %2523 = vmatmul.msk.bf16.gmra.mxu0 %vm641_vm1, %v2811_v31  ;;  %v154_v31 = vld [vmem:[%s4367_s2 + $0x1c8] sm:$0xff] }
  0x3d   :  { %278 = vperm.xlu2 %2917, %v120_v32   ;;  %v153_v32 = vld [vmem:[%s4367_s2 + $0x1c0] sm:$0xff] }
  0x3e   :  { %273 = vperm.xlu1 %2916, %v119_v33   ;;  %268 = vperm.xlu0 %2915, %v118_v34  }
  0x41   :  { %2548 = vmatmul.msk.bf16.gmra.mxu3 %vm641_vm1, %v2836_v51  ;;  %v145_v51 = vld [vmem:[%s4367_s2 + $0x180] sm:$0xff] }
  0x45   :  { %293 = vperm.xlu2 %2917, %v123_v36   ;;  %v2817_v36 = vld [vmem:[%s4366_s1 + $0x48] sm:$0xff] }
  0x46   :  { %288 = vperm.xlu1 %2916, %v122_v37   ;;  %283 = vperm.xlu0 %2915, %v121_v38  }
  0x4c   :  { %2524 = vmatmul.msk.bf16.gmra.mxu0 %vm641_vm1, %v2812_v39 }
  0x4d   :  { %308 = vperm.xlu2 %2917, %v126_v40  }
  0x4e   :  { %303 = vperm.xlu1 %2916, %v125_v41   ;;  %298 = vperm.xlu0 %2915, %v124_v42   ;;  %v150_v42 = vld [vmem:[%s4367_s2 + $0x1a8] sm:$0xff] }
  0x51   :  { %2549 = vmatmul.msk.bf16.gmra.mxu3 %vm641_vm1, %v2837_v60 }
  0x55   :  { %323 = vperm.xlu2 %2917, %v129_v44   ;;  %v152_v44 = vld [vmem:[%s4367_s2 + $0x1b8] sm:$0xff] }
  0x56   :  { %318 = vperm.xlu1 %2916, %v128_v45   ;;  %313 = vperm.xlu0 %2915, %v127_v46  }
  0x5c   :  { %2525 = vmatmul.msk.bf16.gmra.mxu0 %vm641_vm1, %v2813_v47 }
  0x5d   :  { %338 = vperm.xlu2 %2917, %v132_v48  }
  0x5e   :  { %333 = vperm.xlu1 %2916, %v131_v49   ;;  %328 = vperm.xlu0 %2915, %v130_v50  }
  0x5f   :  { %v3162_v57 = vpop.permute.xlu2 %183 }
  0x61   :  { %2550 = vmatmul.msk.bf16.gmra.mxu3 %vm641_vm1, %v2838_v10 }
  0x65   :  { %353 = vperm.xlu2 %2917, %v135_v52   ;;  %v148_v52 = vld [vmem:[%s4367_s2 + $0x198] sm:$0xff] }
  0x66   :  { %348 = vperm.xlu1 %2916, %v134_v53   ;;  %343 = vperm.xlu0 %2915, %v133_v54   ;;  %v147_v53 = vld [vmem:[%s4367_s2 + $0x190] sm:$0xff] }
  0x67   :  { %v3184_v0 = vpop.permute.xlu2 %188 }
  0x6c   :  { %2526 = vmatmul.msk.bf16.gmra.mxu0 %vm641_vm1, %v2814_v55 }
  0x6d   :  { %368 = vperm.xlu2 %2917, %v138_v56  }
  0x6e   :  { %363 = vperm.xlu1 %2916, %v137_v58   ;;  %358 = vperm.xlu0 %2915, %v136_v59   ;;  %v2818_v59 = vld [vmem:[%s4366_s1 + $0x50] sm:$0xff] }
  0x6f   :  { %v3199_v7 = vpop.permute.xlu2 %203 }
  0x71   :  { %2551 = vmatmul.msk.bf16.gmra.mxu3 %vm641_vm1, %v2839_v25 }
  0x75   :  { %383 = vperm.xlu2 %2917, %v141_v61  }
  0x76   :  { %378 = vperm.xlu1 %2916, %v140_v62   ;;  %373 = vperm.xlu0 %2915, %v139_v63  }
  0x77   :  { %v3221_v17 = vpop.permute.xlu2 %218 }
  0x78   :  { %v174_v2 = vpop.permute.xlu1 %173  ;;  %v164_v3 = vpop.permute.xlu0 %163 }
  0x7c   :  { %2527 = vmatmul.msk.bf16.gmra.mxu0 %vm641_vm1, %v2815_v1  ;;  %v1136_v1 = vld [vmem:[%s4369_s4 + $0x8] sm:$0xff] }
  0x7d   :  { %388 = vperm.xlu2 %2917, %v142_v4  }
  0x7e   :  { %398 = vperm.xlu1 %2916, %v144_v5   ;;  %393 = vperm.xlu0 %2915, %v143_v6  }
  0x7f   :  { %v3244_v30 = vpop.permute.xlu2 %233 }
  0x80   :  { %v179_v8 = vpop.permute.xlu1 %178  ;;  %v169_v9 = vpop.permute.xlu0 %168 }
  0x85   :  { %463 = vperm.xlu2 %2917, %v157_v11  }
  0x86   :  { %478 = vperm.xlu1 %2916, %v160_v12   ;;  %473 = vperm.xlu0 %2915, %v159_v13   ;;  %v1139_v12 = vld [vmem:[%s4369_s4 + $0x20] sm:$0xff]  ;;  %v1137_v13 = vld [vmem:[%s4369_s4 + $0x10] sm:$0xff] }
  0x87   :  { %v3271_v45 = vpop.permute.xlu2 %248 }
  0x88   :  { %v3217_v15 = vpop.permute.xlu1 %198  ;;  %v3219_v16 = vpop.permute.xlu0 %193 }
  0x89   :  { %v751_v18 = vpop.f32.mrf.mxu0 }
  0x8a   :  { %v752_v19 = vadd.f32 %v751_v18, %v164_v3  ;;  %v146_v3 = vld [vmem:[%s4367_s2 + $0x188] sm:$0xff] }
  0x8c   :  { %2528 = vmatmul.msk.bf16.gmra.mxu0 %vm641_vm1, %v2816_v14  ;;  %v911_v27 = vmul.f32 0.2, %v752_v19 }
  0x8d   :  { %458 = vperm.xlu2 %2917, %v156_v20   ;;  %v2819_v20 = vld [vmem:[%s4366_s1 + $0x58] sm:$0xff] }
  0x8e   :  { %453 = vperm.xlu1 %2916, %v155_v21   ;;  %468 = vperm.xlu0 %2915, %v158_v22   ;;  %v975_v34 = vmax.f32 %v752_v19, %v911_v27 }
  0x8f   :  { %v3286_v58 = vpop.permute.xlu2 %263 }
  0x90   :  { %v3233_v23 = vpop.permute.xlu1 %213  ;;  %v3235_v24 = vpop.permute.xlu0 %208 }
  0x91   :  { %v753_v26 = vpop.f32.mrf.mxu0 }
  0x92   :  { %v754_v28 = vadd.f32 %v753_v26, %v169_v9 }
  0x94   :  { %v912_v33 = vmul.f32 0.2, %v754_v28  ;;  %v3324_v18 = vpop.f32.mrf.mxu3 }
  0x95   :  { %433 = vperm.xlu2 %2917, %v151_v29   ;;  %v1141_v29 = vld [vmem:[%s4369_s4 + $0x30] sm:$0xff] }
  0x96   :  { %448 = vperm.xlu1 %2916, %v154_v31   ;;  %443 = vperm.xlu0 %2915, %v153_v32   ;;  %v976_v35 = vmax.f32 %v754_v28, %v912_v33  ;;  %v1142_v28 = vld [vmem:[%s4369_s4 + $0x38] sm:$0xff]  ;;  %v1140_v31 = vld [vmem:[%s4369_s4 + $0x28] sm:$0xff] }
  0x97   :  { %v3312_v9 = vpop.permute.xlu2 %278 }
  0x98   :  { %v3255_v37 = vpop.permute.xlu1 %228  ;;  %v3257_v38 = vpop.permute.xlu0 %223  ;;  %v3259_v39 = vpack.c.bf16 %v976_v35, %v975_v34 }
  0x99   :  { %v756_v40 = vpop.f32.mrf.mxu0 }
  0x9a   :  { %v757_v41 = vadd.f32 %v756_v40, %v174_v2  ;;  %v1135_v2 = vld [vmem:[%s4369_s4] sm:$0xff] }
  0x9c   :  { %2529 = vmatmul.msk.bf16.gmra.mxu0 %vm641_vm1, %v2817_v36  ;;  %v913_v49 = vmul.f32 0.2, %v757_v41  ;;  %v3348_v33 = vpop.f32.mrf.mxu3 }
  0x9d   :  { %428 = vperm.xlu2 %2917, %v150_v42   ;;  %v1144_v42 = vld [vmem:[%s4369_s4 + $0x48] sm:$0xff] }
  0x9e   :  { %423 = vperm.xlu1 %2916, %v149_v43   ;;  %438 = vperm.xlu0 %2915, %v152_v44   ;;  %v977_v55 = vmax.f32 %v757_v41, %v913_v49  ;;  %v1145_v41 = vld [vmem:[%s4369_s4 + $0x50] sm:$0xff]  ;;  %v1143_v43 = vld [vmem:[%s4369_s4 + $0x40] sm:$0xff] }
  0x9f   :  { %v3346_v32 = vpop.permute.xlu2 %293 }
  0xa0   :  { %v3273_v46 = vpop.permute.xlu1 %243  ;;  %v3275_v47 = vpop.permute.xlu0 %238 }
  0xa1   :  { %v758_v48 = vpop.f32.mrf.mxu0 }
  0xa2   :  { %v759_v50 = vadd.f32 %v758_v48, %v179_v8 }
  0xa4   :  { %v914_v54 = vmul.f32 0.2, %v759_v50  ;;  %v3364_v48 = vpop.f32.mrf.mxu3 }
  0xa5   :  { %403 = vperm.xlu2 %2917, %v145_v51   ;;  %v2820_v51 = vld [vmem:[%s4366_s1 + $0x60] sm:$0xff] }
  0xa6   :  { %418 = vperm.xlu1 %2916, %v148_v52   ;;  %413 = vperm.xlu0 %2915, %v147_v53   ;;  %v978_v56 = vmax.f32 %v759_v50, %v914_v54 }
  0xa7   :  { %v3366_v49 = vpop.permute.xlu2 %308 }
  0xa8   :  { %v3291_v60 = vpop.permute.xlu1 %258  ;;  %v3293_v61 = vpop.permute.xlu0 %253  ;;  %v3295_v62 = vpack.c.bf16 %v978_v56, %v977_v55  ;;  %v1148_v55 = vld [vmem:[%s4369_s4 + $0x68] sm:$0xff] }
  0xa9   :  { %v761_v63 = vpop.f32.mrf.mxu0 }
  0xaa   :  { %v762_v4 = vadd.f32 %v761_v63, %v3162_v57  ;;  %v1138_v57 = vld [vmem:[%s4369_s4 + $0x18] sm:$0xff] }
  0xab   :  { %v1146_v63 = vld [vmem:[%s4369_s4 + $0x58] sm:$0xff] }
  0xac   :  { %2530 = vmatmul.msk.bf16.gmra.mxu0 %vm641_vm1, %v2818_v59  ;;  %v915_v10 = vmul.f32 0.2, %v762_v4  ;;  %v1147_v59 = vld [vmem:[%s4369_s4 + $0x60] sm:$0xff] }
  0xad   :  { %1174 = vperm.xlu2 %2917, %v1136_v1   ;;  %v3387_v1 = vpop.f32.mrf.mxu3 }
  0xae   :  { %1169 = vperm.xlu1 %2916, %v1135_v2   ;;  %408 = vperm.xlu0 %2915, %v146_v3   ;;  %v979_v19 = vmax.f32 %v762_v4, %v915_v10 }
  0xaf   :  { %v3390_v3 = vpop.permute.xlu2 %323 }
  0xb0   :  { %v3308_v5 = vpop.permute.xlu1 %273  ;;  %v3310_v6 = vpop.permute.xlu0 %268 }
  0xb1   :  { %v763_v8 = vpop.f32.mrf.mxu0 }
  0xb2   :  { %v764_v11 = vadd.f32 %v763_v8, %v3184_v0 }
  0xb4   :  { %v916_v14 = vmul.f32 0.2, %v764_v11 }
  0xb5   :  { %1189 = vperm.xlu2 %2917, %v1139_v12   ;;  %v1150_v12 = vld [vmem:[%s4369_s4 + $0x78] sm:$0xff] }
  0xb6   :  { %1184 = vperm.xlu1 %2916, %v1138_v57   ;;  %1179 = vperm.xlu0 %2915, %v1137_v13   ;;  %v980_v0 = vmax.f32 %v764_v11, %v916_v14  ;;  %v1151_v11 = vld [vmem:[%s4369_s4 + $0x80] sm:$0xff] }
  0xb8   :  { %v3329_v21 = vpop.permute.xlu1 %288  ;;  %v3331_v22 = vpop.permute.xlu0 %283  ;;  %v3333_v25 = vpack.c.bf16 %v980_v0, %v979_v19 }
  0xb9   :  { %v766_v26 = vpop.f32.mrf.mxu0  ;;  %v3406_v19 = vpop.f32.mrf.mxu3 }
  0xba   :  { %v767_v27 = vadd.f32 %v766_v26, %v3219_v16 }
  0xbc   :  { %2531 = vmatmul.msk.bf16.gmra.mxu0 %vm641_vm1, %v2819_v20  ;;  %v917_v36 = vmul.f32 0.2, %v767_v27  ;;  %v2821_v20 = vld [vmem:[%s4366_s1 + $0x68] sm:$0xff] }
  0xbd   :  { %1204 = vperm.xlu2 %2917, %v1142_v28   ;;  %v3415_v28 = vpop.permute.xlu2 %338 }
  0xbe   :  { %1199 = vperm.xlu1 %2916, %v1141_v29   ;;  %1194 = vperm.xlu0 %2915, %v1140_v31   ;;  %v981_v50 = vmax.f32 %v767_v27, %v917_v36  ;;  %v1154_v29 = vld [vmem:[%s4369_s4 + $0x98] sm:$0xff]  ;;  %v1153_v31 = vld [vmem:[%s4369_s4 + $0x90] sm:$0xff] }
  0xc0   :  { %v3350_v16 = vpop.permute.xlu1 %303  ;;  %v3352_v34 = vpop.permute.xlu0 %298 }
  0xc1   :  { %v768_v35 = vpop.f32.mrf.mxu0  ;;  %v3427_v36 = vpop.f32.mrf.mxu3 }
  0xc2   :  { %v769_v40 = vadd.f32 %v768_v35, %v3217_v15  ;;  %v1152_v35 = vld [vmem:[%s4369_s4 + $0x88] sm:$0xff] }
  0xc4   :  { %v918_v44 = vmul.f32 0.2, %v769_v40 }
  0xc5   :  { %1219 = vperm.xlu2 %2917, %v1145_v41  }
  0xc6   :  { %1214 = vperm.xlu1 %2916, %v1144_v42   ;;  %1209 = vperm.xlu0 %2915, %v1143_v43   ;;  %v982_v15 = vmax.f32 %v769_v40, %v918_v44  ;;  %v1157_v43 = vld [vmem:[%s4369_s4 + $0xb0] sm:$0xff]  ;;  %v1156_v44 = vld [vmem:[%s4369_s4 + $0xa8] sm:$0xff] }
  0xc8   :  { %v3371_v52 = vpack.c.bf16 %v982_v15, %v981_v50  ;;  %v3373_v54 = vpop.permute.xlu1 %318  ;;  %v3378_v56 = vpop.permute.xlu0 %313  ;;  %v1155_v50 = vld [vmem:[%s4369_s4 + $0xa0] sm:$0xff] }
  0xc9   :  { %v771_v53 = vpop.f32.mrf.mxu0  ;;  %v3442_v15 = vpop.permute.xlu2 %353 }
  0xca   :  { %v772_v2 = vadd.f32 %v771_v53, %v3199_v7  ;;  %v1149_v7 = vld [vmem:[%s4369_s4 + $0x70] sm:$0xff] }
  0xcb   :  { %v2822_v53 = vld [vmem:[%s4366_s1 + $0x70] sm:$0xff] }
  0xcc   :  { %2532 = vmatmul.msk.bf16.gmra.mxu0 %vm641_vm1, %v2820_v51  ;;  %v919_v8 = vmul.f32 0.2, %v772_v2  ;;  %v3444_v51 = vpop.f32.mrf.mxu3 }
  0xcd   :  { %1234 = vperm.xlu2 %2917, %v1148_v55  }
  0xce   :  { %1229 = vperm.xlu1 %2916, %v1147_v59   ;;  %1224 = vperm.xlu0 %2915, %v1146_v63  }
  0xd0   :  { %v3402_v57 = vpop.permute.xlu1 %333  ;;  %v3404_v14 = vpop.permute.xlu0 %328 }
  0xd1   :  { %v773_v4 = vpop.f32.mrf.mxu0 }
  0xd2   :  { %v774_v10 = vadd.f32 %v773_v4, %v3235_v24  ;;  %v983_v24 = vmax.f32 %v772_v2, %v919_v8  ;;  %v1160_v2 = vld [vmem:[%s4369_s4 + $0xc8] sm:$0xff]  ;;  %v1159_v4 = vld [vmem:[%s4369_s4 + $0xc0] sm:$0xff]  ;;  %v1158_v8 = vld [vmem:[%s4369_s4 + $0xb8] sm:$0xff] }
  0xd4   :  { %v920_v13 = vmul.f32 0.2, %v774_v10 }
  0xd5   :  { %1249 = vperm.xlu2 %2917, %v1151_v11   ;;  %v3465_v11 = vpop.permute.xlu2 %368 }
  0xd6   :  { %1244 = vperm.xlu1 %2916, %v1150_v12   ;;  %1239 = vperm.xlu0 %2915, %v1149_v7   ;;  %v984_v0 = vmax.f32 %v774_v10, %v920_v13  ;;  %v3463_v10 = vpop.f32.mrf.mxu3  ;;  %4375 = vst [vmem:[#allocation8_spill] sm:$0xff] %v3465_v11  ;;  %v1163_v13 = vld [vmem:[%s4369_s4 + $0xe0] sm:$0xff] }
  0xd8   :  { %v3411_v26 = vpack.c.bf16 %v984_v0, %v983_v24  ;;  %v3429_v40 = vpop.permute.xlu1 %348  ;;  %v3431_v41 = vpop.permute.xlu0 %343  ;;  %v1162_v0 = vld [vmem:[%s4369_s4 + $0xd8] sm:$0xff] }
  0xd9   :  { %v3413_v27 = vpop.f32.mrf.mxu0 }
  0xdc   :  { %2533 = vmatmul.msk.bf16.gmra.mxu0 %vm641_vm1, %v2821_v20  ;;  %v1161_v20 = vld [vmem:[%s4369_s4 + $0xd0] sm:$0xff] }
  0xdd   :  { %1264 = vperm.xlu2 %2917, %v1154_v29  }
  0xde   :  { %1259 = vperm.xlu1 %2916, %v1153_v31   ;;  %1254 = vperm.xlu0 %2915, %v1152_v35   ;;  %v3480_v29 = vpop.f32.mrf.mxu3  ;;  %v2823_v31 = vld [vmem:[%s4366_s1 + $0x78] sm:$0xff]  ;;  %v3485_v35 = vpop.permute.xlu2 %383 }
  0xdf   :  { %4378 = vst [vmem:[#allocation11_spill] sm:$0xff] %v3485_v35 }
  0xe0   :  { %v3449_v55 = vpop.permute.xlu1 %363  ;;  %v3451_v59 = vpop.permute.xlu0 %358 }
  0xe1   :  { %v778_v42 = vpop.f32.mrf.mxu0  ;;  %4373 = vst [vmem:[#allocation6_spill] sm:$0xff] %v3449_v55 }
  0xe2   :  { %4374 = vst [vmem:[#allocation7_spill] sm:$0xff] %v3451_v59 }
  0xe5   :  { %1279 = vperm.xlu2 %2917, %v1157_v43  }
  0xe6   :  { %1274 = vperm.xlu1 %2916, %v1156_v44   ;;  %1269 = vperm.xlu0 %2915, %v1155_v50   ;;  %v1166_v44 = vld [vmem:[%s4369_s4 + $0xf8] sm:$0xff]  ;;  %v1165_v50 = vld [vmem:[%s4369_s4 + $0xf0] sm:$0xff] }
  0xe8   :  { %v3467_v7 = vpop.permute.xlu1 %378  ;;  %v3472_v24 = vpop.permute.xlu0 %373 }
  0xe9   :  { %v781_v63 = vpop.f32.mrf.mxu0  ;;  %4376 = vst [vmem:[#allocation9_spill] sm:$0xff] %v3467_v7 }
  0xea   :  { %4377 = vst [vmem:[#allocation10_spill] sm:$0xff] %v3472_v24  ;;  %v782_v55 = vadd.f32 %v781_v63, %v3257_v38 }
  0xec   :  { %2534 = vmatmul.msk.bf16.gmra.mxu0 %vm641_vm1, %v2822_v53  ;;  %v1164_v53 = vld [vmem:[%s4369_s4 + $0xe8] sm:$0xff]  ;;  %v923_v63 = vmul.f32 0.2, %v782_v55 }
  0xed   :  { %1294 = vperm.xlu2 %2917, %v1160_v2  }
  0xee   :  { %1289 = vperm.xlu1 %2916, %v1159_v4   ;;  %1284 = vperm.xlu0 %2915, %v1158_v8   ;;  %v3501_v8 = vpop.f32.mrf.mxu3  ;;  %v987_v59 = vmax.f32 %v782_v55, %v923_v63 }
  0xf0   :  { %v3497_v2 = vpop.permute.xlu1 %398  ;;  %v3499_v4 = vpop.permute.xlu0 %393 }
  0xf1   :  { %v783_v12 = vpop.f32.mrf.mxu0  ;;  %4379 = vst [vmem:[#allocation12_spill] sm:$0xff] %v3497_v2 }
  0xf2   :  { %4380 = vst [vmem:[#allocation13_spill] sm:$0xff] %v3499_v4 }
  0xf5   :  { %1309 = vperm.xlu2 %2917, %v1163_v13  }
  0xf6   :  { %1304 = vperm.xlu1 %2916, %v1162_v0   ;;  %1299 = vperm.xlu0 %2915, %v1161_v20   ;;  %v784_v0 = vadd.f32 %v783_v12, %v3255_v37  ;;  %v2067_v37 = vld [vmem:[%s4370_s5] sm:$0xff]  ;;  %v779_v12 = vadd.f32 %v778_v42, %v3221_v17  ;;  %v3519_v38 = vpop.f32.mrf.mxu3 }
  0xf7   :  { %v2824_v17 = vld [vmem:[%s4366_s1 + $0x80] sm:$0xff] }
  0xf8   :  { %v474_v2 = vpop.permute.xlu0 %473  ;;  %v922_v42 = vmul.f32 0.2, %v779_v12 }
  0xf9   :  { %v786_v43 = vpop.f32.mrf.mxu0 }
  0xfa   :  { %v787_v13 = vadd.f32 %v786_v43, %v3244_v30  ;;  %v2068_v30 = vld [vmem:[%s4370_s5 + $0x8] sm:$0xff]  ;;  %v924_v43 = vmul.f32 0.2, %v784_v0  ;;  %v986_v55 = vmax.f32 %v779_v12, %v922_v42  ;;  %v2075_v12 = vld [vmem:[%s4370_s5 + $0x40] sm:$0xff] }
  0xfb   :  { %v2825_v42 = vld [vmem:[%s4366_s1 + $0x88] sm:$0xff] }
  0xfc   :  { %2535 = vmatmul.msk.bf16.gmra.mxu0 %vm641_vm1, %v2823_v31  ;;  %v3505_v31 = vpop.permute.xlu2 %388  ;;  %v925_v11 = vmul.f32 0.2, %v787_v13 }
  0xfd   :  { %1324 = vperm.xlu2 %2917, %v1166_v44   ;;  %4381 = vst [vmem:[#allocation14_spill] sm:$0xff] %v3505_v31  ;;  %v2069_v44 = vld [vmem:[%s4370_s5 + $0x10] sm:$0xff] }
  0xfe   :  { %1319 = vperm.xlu1 %2916, %v1165_v50   ;;  %1314 = vperm.xlu0 %2915, %v1164_v53   ;;  %v3523_v53 = vpop.permute.xlu1 %478 }
 0x101   :  { %v788_v20 = vpop.f32.mrf.mxu0 }
 0x102   :  { %v789_v24 = vadd.f32 %v788_v20, %v3275_v47  ;;  %v777_v47 = vadd.f32 %v3413_v27, %v3233_v23  ;;  %v989_v20 = vmax.f32 %v787_v13, %v925_v11  ;;  %v2072_v23 = vld [vmem:[%s4370_s5 + $0x28] sm:$0xff] }
 0x104   :  { %v926_v50 = vmul.f32 0.2, %v789_v24  ;;  %v921_v4 = vmul.f32 0.2, %v777_v47  ;;  %v3532_v27 = vpop.permute.xlu2 %463 }
 0x105   :  { %2111 = vperm.xlu2 %2917, %v2069_v44   ;;  %v988_v44 = vmax.f32 %v784_v0, %v924_v43 }
 0x106   :  { %2106 = vperm.xlu1 %2916, %v2068_v30   ;;  %2101 = vperm.xlu0 %2915, %v2067_v37   ;;  %v990_v7 = vmax.f32 %v789_v24, %v926_v50  ;;  %v2071_v24 = vld [vmem:[%s4370_s5 + $0x20] sm:$0xff]  ;;  %v985_v13 = vmax.f32 %v777_v47, %v921_v4  ;;  %v469_v37 = vpop.permute.xlu0 %468 }
 0x107   :  { %v1045_v11 = vpack.c.bf16 %v988_v44, %v987_v59  ;;  %v454_v59 = vpop.permute.xlu1 %453 }
 0x108   :  { %v1046_v35 = vpack.c.bf16 %v990_v7, %v989_v20  ;;  %v2070_v7 = vld [vmem:[%s4370_s5 + $0x18] sm:$0xff]  ;;  %v1044_v30 = vpack.c.bf16 %v986_v55, %v985_v13  ;;  %v2076_v55 = vld [vmem:[%s4370_s5 + $0x48] sm:$0xff] }
 0x109   :  { %v791_v31 = vpop.f32.mrf.mxu0 }
 0x10a   :  { %1647 = vmatpush.bf16.msra.mxu1 %v1046_v35  ;;  %2905 = vmatpush.bf16.msra.mxu2 %v1046_v35  ;;  %v3540_v35 = vpop.f32.mrf.mxu3  ;;  %v792_v0 = vadd.f32 %v791_v31, %v3273_v46  ;;  %v2074_v46 = vld [vmem:[%s4370_s5 + $0x38] sm:$0xff]  ;;  %v2073_v31 = vld [vmem:[%s4370_s5 + $0x30] sm:$0xff] }
 0x10c   :  { %2536 = vmatmul.msk.bf16.gmra.mxu0 %vm641_vm1, %v2824_v17  ;;  %v927_v50 = vmul.f32 0.2, %v792_v0  ;;  %v459_v20 = vpop.permute.xlu2 %458 }
 0x10d   :  { %2126 = vperm.xlu2 %2917, %v2072_v23  }
 0x10e   :  { %1648 = vmatpush.bf16.msra.mxu1 %v1045_v11  ;;  %2906 = vmatpush.bf16.msra.mxu2 %v1045_v11  ;;  %v991_v17 = vmax.f32 %v792_v0, %v927_v50  ;;  %v2078_v11 = vld [vmem:[%s4370_s5 + $0x58] sm:$0xff] }
 0x10f   :  { %2121 = vperm.xlu1 %2916, %v2071_v24   ;;  %2116 = vperm.xlu0 %2915, %v2070_v7   ;;  %v449_v24 = vpop.permute.xlu1 %448  ;;  %v2077_v7 = vld [vmem:[%s4370_s5 + $0x50] sm:$0xff] }
 0x111   :  { %v793_v43 = vpop.f32.mrf.mxu0 }
 0x112   :  { %v794_v63 = vadd.f32 %v793_v43, %v3271_v45  ;;  %1649 = vmatpush.bf16.msra.mxu1 %v1044_v30  ;;  %2907 = vmatpush.bf16.msra.mxu2 %v1044_v30  ;;  %v906_v47 = vpop.f32.mrf.mxu3  ;;  %v2554_v43 = vld [vmem:[%s4368_s3] sm:$0xf] }
 0x113   :  { %v907_v0 = vadd.f32 %v906_v47, %v474_v2  ;;  %v2081_v2 = vld [vmem:[%s4370_s5 + $0x70] sm:$0xff]  ;;  %v902_v47 = vadd.f32 %v3519_v38, %v3532_v27 }
 0x114   :  { %v928_v4 = vmul.f32 0.2, %v794_v63  ;;  %v434_v50 = vpop.permute.xlu2 %433 }
 0x115   :  { %2141 = vperm.xlu2 %2917, %v2075_v12   ;;  %v973_v12 = vmul.f32 0.2, %v907_v0 }
 0x116   :  { %1650 = vmatpush.bf16.msra.mxu1 %v3411_v26  ;;  %2908 = vmatpush.bf16.msra.mxu2 %v3411_v26  ;;  %v992_v45 = vmax.f32 %v794_v63, %v928_v4  ;;  %v444_v26 = vpop.permute.xlu0 %443  ;;  %v2842_v63 = vld [vmem:[%s4368_s3 + $0xc] sm:$0xf0] }
 0x117   :  { %2136 = vperm.xlu1 %2916, %v2074_v46   ;;  %2131 = vperm.xlu0 %2915, %v2073_v31   ;;  %v424_v38 = vpop.permute.xlu1 %423 }
 0x118   :  { %v3558_v44 = vpack.c.bf16 %v992_v45, %v991_v17  ;;  %v1037_v17 = vmax.f32 %v907_v0, %v973_v12 }
 0x119   :  { %v796_v23 = vpop.f32.mrf.mxu0 }
 0x11a   :  { %1651 = vmatpush.bf16.msra.mxu1 %v3371_v52  ;;  %2909 = vmatpush.bf16.msra.mxu2 %v3371_v52  ;;  %v908_v13 = vpop.f32.mrf.mxu3  ;;  %v797_v52 = vadd.f32 %v796_v23, %v3293_v61  ;;  %v3583_v61 = vadd.f32 %v3480_v29, %v454_v59  ;;  %v2682_v29 = vld [vmem:[%s4368_s3 + $0x100] sm:$0xf]  ;;  %v2874_v59 = vld [vmem:[%s4368_s3 + $0x10c] sm:$0xf0]  ;;  %v892_v23 = vadd.f32 %v3444_v51, %v444_v26 }
 0x11b   :  { %v909_v30 = vadd.f32 %v908_v13, %v3523_v53  ;;  %v899_v53 = vadd.f32 %v3501_v8, %v459_v20  ;;  %v904_v8 = vadd.f32 %v3540_v35, %v469_v37  ;;  %v2555_v20 = vor.u32 %v2842_v63, %v2554_v43  ;;  %v2826_v51 = vld [vmem:[%s4366_s1 + $0x90] sm:$0xff] }
 0x11c   :  { %2537 = vmatmul.msk.bf16.gmra.mxu0 %vm641_vm1, %v2825_v42  ;;  %v929_v46 = vmul.f32 0.2, %v797_v52  ;;  %v2683_v35 = vor.u32 %v2874_v59, %v2682_v29  ;;  %v894_v37 = vadd.f32 %v3463_v10, %v449_v24  ;;  %v887_v63 = vadd.f32 %v3406_v19, %v434_v50 }
 0x11d   :  { %2156 = vperm.xlu2 %2917, %v2078_v11   ;;  %v974_v4 = vmul.f32 0.2, %v909_v30  ;;  %v969_v11 = vmul.f32 0.2, %v3583_v61  ;;  %v970_v0 = vmul.f32 0.2, %v899_v53  ;;  %v882_v50 = vadd.f32 %v3364_v48, %v424_v38 }
 0x11e   :  { %1652 = vmatpush.bf16.msra.mxu1 %v3333_v25  ;;  %2910 = vmatpush.bf16.msra.mxu2 %v3333_v25  ;;  %v439_v27 = vpop.permute.xlu0 %438  ;;  %v967_v10 = vmul.f32 0.2, %v892_v23  ;;  %v2087_v38 = vld [vmem:[%s4370_s5 + $0xa0] sm:$0xff] }
 0x11f   :  { %2151 = vperm.xlu1 %2916, %v2077_v7   ;;  %2146 = vperm.xlu0 %2915, %v2076_v55   ;;  %v1038_v45 = vmax.f32 %v909_v30, %v974_v4  ;;  %v971_v7 = vmul.f32 0.2, %v902_v47  ;;  %v972_v55 = vmul.f32 0.2, %v904_v8  ;;  %v1033_v24 = vmax.f32 %v3583_v61, %v969_v11  ;;  %v429_v4 = vpop.permute.xlu2 %428 }
 0x120   :  { %v1034_v29 = vmax.f32 %v899_v53, %v970_v0  ;;  %v884_v19 = vadd.f32 %v3387_v1, %v429_v4  ;;  %v965_v61 = vmul.f32 0.2, %v887_v63  ;;  %v1031_v59 = vmax.f32 %v892_v23, %v967_v10  ;;  %v2085_v0 = vld [vmem:[%s4370_s5 + $0x90] sm:$0xff] }
 0x121   :  { %v798_v25 = vpop.f32.mrf.mxu0  ;;  %v1070_v13 = vpack.c.bf16 %v1038_v45, %v1037_v17  ;;  %v1035_v30 = vmax.f32 %v902_v47, %v971_v7  ;;  %v1036_v26 = vmax.f32 %v904_v8, %v972_v55  ;;  %v2083_v47 = vld [vmem:[%s4370_s5 + $0x80] sm:$0xff] }
 0x122   :  { %v799_v31 = vadd.f32 %v798_v25, %v3291_v60  ;;  %1653 = vmatpush.bf16.msra.mxu1 %v3295_v62  ;;  %2911 = vmatpush.bf16.msra.mxu2 %v3295_v62  ;;  %v2080_v60 = vld [vmem:[%s4370_s5 + $0x68] sm:$0xff]  ;;  %v2079_v62 = vld [vmem:[%s4370_s5 + $0x60] sm:$0xff]  ;;  %v993_v25 = vmax.f32 %v797_v52, %v929_v46  ;;  %v1068_v8 = vpack.c.bf16 %v1034_v29, %v1033_v24  ;;  %v964_v48 = vmul.f32 0.2, %v884_v19 }
 0x123   :  { %v2084_v46 = vld [vmem:[%s4370_s5 + $0x88] sm:$0xff]  ;;  %v1029_v45 = vmax.f32 %v887_v63, %v965_v61 }
 0x124   :  { %v930_v42 = vmul.f32 0.2, %v799_v31  ;;  %v1028_v24 = vmax.f32 %v884_v19, %v964_v48  ;;  %v2090_v19 = vld [vmem:[%s4370_s5 + $0xb8] sm:$0xff]  ;;  %v2088_v61 = vld [vmem:[%s4370_s5 + $0xa8] sm:$0xff] }
 0x125   :  { %2171 = vperm.xlu2 %2917, %v2081_v2   ;;  %v889_v2 = vadd.f32 %v3427_v36, %v439_v27  ;;  %v2082_v36 = vld [vmem:[%s4370_s5 + $0x78] sm:$0xff]  ;;  %v2846_v27 = vld [vmem:[%s4368_s3 + $0x2c] sm:$0xf0] }
 0x126   :  { %1654 = vmatpush.bf16.msra.mxu1 %v3259_v39  ;;  %2912 = vmatpush.bf16.msra.mxu2 %v3259_v39  ;;  %v994_v43 = vmax.f32 %v799_v31, %v930_v42  ;;  %v1069_v39 = vpack.c.bf16 %v1036_v26, %v1035_v30  ;;  %v968_v31 = vmul.f32 0.2, %v894_v37  ;;  %v414_v17 = vpop.permute.xlu0 %413 }
 0x127   :  { %2166 = vperm.xlu1 %2916, %v2080_v60   ;;  %2161 = vperm.xlu0 %2915, %v2079_v62   ;;  %v966_v53 = vmul.f32 0.2, %v889_v2  ;;  %v963_v62 = vmul.f32 0.2, %v882_v50  ;;  %v877_v23 = vadd.f32 %v3324_v18, %v414_v17  ;;  %v2698_v18 = vld [vmem:[%s4368_s3 + $0x120] sm:$0xf] }
 0x128   :  { %v3617_v52 = vpack.c.bf16 %v994_v43, %v993_v25  ;;  %v1032_v60 = vmax.f32 %v894_v37, %v968_v31  ;;  %v2878_v37 = vld [vmem:[%s4368_s3 + $0x12c] sm:$0xf0]  ;;  %v2086_v25 = vld [vmem:[%s4370_s5 + $0x98] sm:$0xff]  ;;  %v2092_v17 = vld [vmem:[%s4370_s5 + $0xc8] sm:$0xff] }
 0x129   :  { %v801_v12 = vpop.f32.mrf.mxu0  ;;  %1655 = vmatmul.bf16.vlgmr.msra.gmra.mxu1 %v2555_v20  ;;  %1695 = vmatmul.bf16.vlgmr.msra.gmra.mxu2 %v2683_v35  ;;  %v419_v20 = vpop.permute.xlu1 %418  ;;  %v1030_v55 = vmax.f32 %v889_v2, %v966_v53  ;;  %v2699_v63 = vor.u32 %v2878_v37, %v2698_v18  ;;  %v2586_v53 = vld [vmem:[%s4368_s3 + $0x40] sm:$0xf] }
 0x12a   :  { %1914 = vmatpush.bf16.msrb.mxu1 %v1070_v13  ;;  %v802_v1 = vadd.f32 %v801_v12, %v3286_v58  ;;  %v879_v42 = vadd.f32 %v3348_v33, %v419_v20  ;;  %v1067_v11 = vpack.c.bf16 %v1032_v60, %v1031_v59  ;;  %v2570_v58 = vld [vmem:[%s4368_s3 + $0x20] sm:$0xf]  ;;  %v1027_v13 = vmax.f32 %v882_v50, %v963_v62  ;;  %v2089_v50 = vld [vmem:[%s4370_s5 + $0xb0] sm:$0xff] }
 0x12b   :  { %v2571_v26 = vor.u32 %v2846_v27, %v2570_v58  ;;  %v2882_v62 = vld [vmem:[%s4368_s3 + $0x14c] sm:$0xf0]  ;;  %v2096_v27 = vld [vmem:[%s4370_s5 + $0xe8] sm:$0xff]  ;;  %v2361_v37 = vld [vmem:[#allocation2] sm:$0x1] }
 0x12c   :  { %2538 = vmatmul.msk.bf16.gmra.mxu0 %vm641_vm1, %v2826_v51  ;;  %v931_v35 = vmul.f32 0.2, %v802_v1  ;;  %v962_v30 = vmul.f32 0.2, %v879_v42  ;;  %v1066_v51 = vpack.c.bf16 %v1030_v55, %v1029_v45  ;;  %v2091_v45 = vld [vmem:[%s4370_s5 + $0xc0] sm:$0xff] }
 0x12d   :  { %2186 = vperm.xlu2 %2917, %v2084_v46   ;;  %v1065_v46 = vpack.c.bf16 %v1028_v24, %v1027_v13  ;;  %v2602_v55 = vld [vmem:[%s4368_s3 + $0x60] sm:$0xf]  ;;  %v2854_v13 = vld [vmem:[%s4368_s3 + $0x6c] sm:$0xf0] }
 0x12e   :  { %1915 = vmatpush.bf16.msrb.mxu1 %v1069_v39  ;;  %v995_v10 = vmax.f32 %v802_v1, %v931_v35  ;;  %v2827_v39 = vld [vmem:[%s4366_s1 + $0x98] sm:$0xff]  ;;  %v1026_v4 = vmax.f32 %v879_v42, %v962_v30  ;;  %v2850_v1 = vld [vmem:[%s4368_s3 + $0x4c] sm:$0xf0]  ;;  %v2095_v35 = vld [vmem:[%s4370_s5 + $0xe0] sm:$0xff] }
 0x12f   :  { %2181 = vperm.xlu1 %2916, %v2083_v47   ;;  %2176 = vperm.xlu0 %2915, %v2082_v36   ;;  %v2587_v42 = vor.u32 %v2850_v1, %v2586_v53  ;;  %v2098_v30 = vld [vmem:[%s4370_s5 + $0xf8] sm:$0xff]  ;;  %v2618_v24 = vld [vmem:[%s4368_s3 + $0x80] sm:$0xf] }
 0x130   :  { %v2831_v1 = vld [vmem:[%s4366_s1 + $0xb8] sm:$0xff] }
 0x131   :  { %v803_v7 = vpop.f32.mrf.mxu0 }
 0x132   :  { %1916 = vmatpush.bf16.msrb.mxu1 %v1068_v8  ;;  %v804_v33 = vadd.f32 %v803_v7, %v3310_v6  ;;  %v961_v6 = vmul.f32 0.2, %v877_v23  ;;  %v2093_v8 = vld [vmem:[%s4370_s5 + $0xd0] sm:$0xff]  ;;  %v2828_v7 = vld [vmem:[%s4366_s1 + $0xa0] sm:$0xff] }
 0x134   :  { %v932_v43 = vmul.f32 0.2, %v804_v33  ;;  %v1025_v2 = vmax.f32 %v877_v23, %v961_v6  ;;  %v2097_v6 = vld [vmem:[%s4370_s5 + $0xf0] sm:$0xff] }
 0x135   :  { %2201 = vperm.xlu2 %2917, %v2087_v38  }
 0x136   :  { %1917 = vmatpush.bf16.msrb.mxu1 %v1067_v11  ;;  %v996_v12 = vmax.f32 %v804_v33, %v932_v43  ;;  %v1064_v59 = vpack.c.bf16 %v1026_v4, %v1025_v2  ;;  %v2094_v33 = vld [vmem:[%s4370_s5 + $0xd8] sm:$0xff]  ;;  %v2603_v43 = vor.u32 %v2854_v13, %v2602_v55  ;;  %v2890_v4 = vld [vmem:[%s4368_s3 + $0x18c] sm:$0xf0] }
 0x137   :  { %2196 = vperm.xlu1 %2916, %v2086_v25   ;;  %2191 = vperm.xlu0 %2915, %v2085_v0   ;;  %v2730_v25 = vld [vmem:[%s4368_s3 + $0x160] sm:$0xf]  ;;  %v2886_v0 = vld [vmem:[%s4368_s3 + $0x16c] sm:$0xf0] }
 0x138   :  { %v3660_v31 = vpack.c.bf16 %v996_v12, %v995_v10  ;;  %v2858_v12 = vld [vmem:[%s4368_s3 + $0x8c] sm:$0xf0] }
 0x139   :  { %v806_v29 = vpop.f32.mrf.mxu0  ;;  %1660 = vmatmul.bf16.gmra.mxu1 %v2571_v26  ;;  %1700 = vmatmul.bf16.gmra.mxu2 %v2699_v63  ;;  %v2829_v26 = vld [vmem:[%s4366_s1 + $0xa8] sm:$0xff]  ;;  %v2619_v2 = vor.u32 %v2858_v12, %v2618_v24 }
 0x13a   :  { %1918 = vmatpush.bf16.msrb.mxu1 %v1066_v51  ;;  %v807_v47 = vadd.f32 %v806_v29, %v3308_v5  ;;  %v2714_v5 = vld [vmem:[%s4368_s3 + $0x140] sm:$0xf]  ;;  %v2731_v51 = vor.u32 %v2886_v0, %v2730_v25  ;;  %v2830_v29 = vld [vmem:[%s4366_s1 + $0xb0] sm:$0xff] }
 0x13b   :  { %v2832_v25 = vld [vmem:[%s4366_s1 + $0xc0] sm:$0xff]  ;;  %s2383_s1 = sshll.u32 %s4372_s7, 4  ;;  %s2384_s1 = int_to_ptr.hbm [resolvable:$true] %s2383_s1 }
 0x13c   :  { %2539 = vmatmul.msk.bf16.gmra.mxu0 %vm641_vm1, %v2827_v39  ;;  %v933_v60 = vmul.f32 0.2, %v807_v47  ;;  %v2746_v39 = vld [vmem:[%s4368_s3 + $0x180] sm:$0xf] }
 0x13d   :  { %2216 = vperm.xlu2 %2917, %v2090_v19  }
 0x13e   :  { %1919 = vmatpush.bf16.msrb.mxu1 %v1065_v46  ;;  %v997_v23 = vmax.f32 %v807_v47, %v933_v60  ;;  %v2747_v46 = vor.u32 %v2890_v4, %v2746_v39  ;;  %v2762_v47 = vld [vmem:[%s4368_s3 + $0x1a0] sm:$0xf] }
 0x13f   :  { %2211 = vperm.xlu1 %2916, %v2089_v50   ;;  %2206 = vperm.xlu0 %2915, %v2088_v61   ;;  %v2634_v61 = vld [vmem:[%s4368_s3 + $0xa0] sm:$0xf] }
 0x140   :  { %v2666_v39 = vld [vmem:[%s4368_s3 + $0xe0] sm:$0xf] }
 0x141   :  { %v808_v36 = vpop.f32.mrf.mxu0  ;;  %v2794_v4 = vld [vmem:[%s4368_s3 + $0x1e0] sm:$0xf] }
 0x142   :  { %1920 = vmatpush.bf16.msrb.mxu1 %v1064_v59  ;;  %v809_v48 = vadd.f32 %v808_v36, %v3312_v9  ;;  %v2715_v9 = vor.u32 %v2882_v62, %v2714_v5  ;;  %v2862_v59 = vld [vmem:[%s4368_s3 + $0xac] sm:$0xf0]  ;;  %v2650_v62 = vld [vmem:[%s4368_s3 + $0xc0] sm:$0xf] }
 0x143   :  { %v2894_v36 = vld [vmem:[%s4368_s3 + $0x1ac] sm:$0xf0] }
 0x144   :  { %v934_v20 = vmul.f32 0.2, %v809_v48  ;;  %v2763_v53 = vor.u32 %v2894_v36, %v2762_v47 }
 0x145   :  { %2231 = vperm.xlu2 %2917, %v2093_v8   ;;  %v2635_v8 = vor.u32 %v2862_v59, %v2634_v61 }
 0x146   :  { %v998_v11 = vmax.f32 %v809_v48, %v934_v20 }
 0x147   :  { %2226 = vperm.xlu1 %2916, %v2092_v17   ;;  %2221 = vperm.xlu0 %2915, %v2091_v45   ;;  %v2866_v17 = vld [vmem:[%s4368_s3 + $0xcc] sm:$0xf0]  ;;  %v2778_v45 = vld [vmem:[%s4368_s3 + $0x1c0] sm:$0xf] }
 0x148   :  { %v3698_v38 = vpack.c.bf16 %v998_v11, %v997_v23 }
 0x149   :  { %v3700_v58 = vpop.f32.mrf.mxu0  ;;  %1665 = vmatmul.bf16.gmra.mxu1 %v2587_v42  ;;  %1705 = vmatmul.bf16.gmra.mxu2 %v2715_v9  ;;  %v2898_v42 = vld [vmem:[%s4368_s3 + $0x1cc] sm:$0xf0] }
 0x14c   :  { %2540 = vmatmul.msk.bf16.gmra.mxu0 %vm641_vm1, %v2828_v7 }
 0x14d   :  { %2246 = vperm.xlu2 %2917, %v2096_v27   ;;  %v2651_v27 = vor.u32 %v2866_v17, %v2650_v62  ;;  %v2556_v62 = vld [vmem:[%s4368_s3 + $0x10] sm:$0xf0] }
 0x14f   :  { %2241 = vperm.xlu1 %2916, %v2095_v35   ;;  %2236 = vperm.xlu0 %2915, %v2094_v33   ;;  %v2779_v35 = vor.u32 %v2898_v42, %v2778_v45 }
 0x151   :  { %v813_v18 = vpop.f32.mrf.mxu0 }
 0x155   :  { %2364 = vperm.xlu2 %2917, %v2361_v37  }
 0x157   :  { %2256 = vperm.xlu1 %2916, %v2098_v30   ;;  %2251 = vperm.xlu0 %2915, %v2097_v6   ;;  %v812_v6 = vadd.f32 %v3700_v58, %v3331_v22  ;;  %v2870_v58 = vld [vmem:[%s4368_s3 + $0xec] sm:$0xf0] }
 0x158   :  { %v2667_v61 = vor.u32 %v2870_v58, %v2666_v39  ;;  %v2856_v58 = vld [vmem:[%s4368_s3 + $0x84] sm:$0xf] }
 0x159   :  { %v816_v63 = vpop.f32.mrf.mxu0  ;;  %1670 = vmatmul.bf16.gmra.mxu1 %v2603_v43  ;;  %1710 = vmatmul.bf16.gmra.mxu2 %v2731_v51 }
 0x15a   :  { %v817_v33 = vadd.f32 %v816_v63, %v3346_v32 }
 0x15c   :  { %2541 = vmatmul.msk.bf16.gmra.mxu0 %vm641_vm1, %v2829_v26  ;;  %v937_v43 = vmul.f32 0.2, %v817_v33 }
 0x15e   :  { %v1001_v24 = vmax.f32 %v817_v33, %v937_v43 }
 0x161   :  { %v818_v10 = vpop.f32.mrf.mxu0 }
 0x162   :  { %v819_v23 = vadd.f32 %v818_v10, %v3352_v34  ;;  %v935_v10 = vmul.f32 0.2, %v812_v6 }
 0x164   :  { %v938_v0 = vmul.f32 0.2, %v819_v23 }
 0x166   :  { %v1002_v26 = vmax.f32 %v819_v23, %v938_v0  ;;  %v2848_v0 = vld [vmem:[%s4368_s3 + $0x44] sm:$0xf] }
 0x169   :  { %v821_v19 = vpop.f32.mrf.mxu0  ;;  %1675 = vmatmul.bf16.gmra.mxu1 %v2619_v2  ;;  %1715 = vmatmul.bf16.gmra.mxu2 %v2747_v46  ;;  %v999_v2 = vmax.f32 %v812_v6, %v935_v10  ;;  %v2852_v10 = vld [vmem:[%s4368_s3 + $0x64] sm:$0xf] }
 0x16c   :  { %2542 = vmatmul.msk.bf16.gmra.mxu0 %vm641_vm1, %v2830_v29 }
 0x171   :  { %v823_v50 = vpop.f32.mrf.mxu0 }
 0x172   :  { %v824_v5 = vadd.f32 %v823_v50, %v3366_v49 }
 0x174   :  { %v940_v11 = vmul.f32 0.2, %v824_v5 }
 0x176   :  { %v1004_v30 = vmax.f32 %v824_v5, %v940_v11  ;;  %v2840_v5 = vld [vmem:[%s4368_s3 + $0x4] sm:$0xf] }
 0x179   :  { %v826_v60 = vpop.f32.mrf.mxu0  ;;  %1680 = vmatmul.bf16.gmra.mxu1 %v2635_v8  ;;  %1720 = vmatmul.bf16.gmra.mxu2 %v2763_v53 }
 0x17a   :  { %v827_v48 = vadd.f32 %v826_v60, %v3378_v56  ;;  %v822_v56 = vadd.f32 %v821_v19, %v3350_v16  ;;  %v814_v16 = vadd.f32 %v813_v18, %v3329_v21  ;;  %v1052_v18 = vpack.c.bf16 %v1002_v26, %v1001_v24  ;;  %v2604_v24 = vld [vmem:[%s4368_s3 + $0x70] sm:$0xf0] }
 0x17c   :  { %2543 = vmatmul.msk.bf16.gmra.mxu0 %vm641_vm1, %v2831_v1  ;;  %v941_v49 = vmul.f32 0.2, %v827_v48  ;;  %v939_v37 = vmul.f32 0.2, %v822_v56  ;;  %v936_v51 = vmul.f32 0.2, %v814_v16 }
 0x17e   :  { %v1005_v55 = vmax.f32 %v827_v48, %v941_v49  ;;  %v1003_v32 = vmax.f32 %v822_v56, %v939_v37  ;;  %v1000_v12 = vmax.f32 %v814_v16, %v936_v51 }
 0x180   :  { %v1053_v63 = vpack.c.bf16 %v1004_v30, %v1003_v32  ;;  %v1051_v50 = vpack.c.bf16 %v1000_v12, %v999_v2  ;;  %v2588_v30 = vld [vmem:[%s4368_s3 + $0x50] sm:$0xf0] }
 0x181   :  { %v828_v20 = vpop.f32.mrf.mxu0  ;;  %v2591_v6 = vor.u32 %v2848_v0, %v2588_v30 }
 0x182   :  { %v829_v9 = vadd.f32 %v828_v20, %v3373_v54 }
 0x184   :  { %v942_v7 = vmul.f32 0.2, %v829_v9 }
 0x186   :  { %v1006_v13 = vmax.f32 %v829_v9, %v942_v7  ;;  %v2844_v9 = vld [vmem:[%s4368_s3 + $0x24] sm:$0xf] }
 0x188   :  { %v1054_v34 = vpack.c.bf16 %v1006_v13, %v1005_v55 }
 0x189   :  { %1685 = vmatmul.bf16.gmra.mxu1 %v2651_v27  ;;  %1725 = vmatmul.bf16.gmra.mxu2 %v2779_v35  ;;  %v831_v54 = vpop.f32.mrf.mxu0 }
 0x18a   :  { %1736 = vmatpush.bf16.msrb.mxu2 %v1054_v34  ;;  %v832_v21 = vadd.f32 %v831_v54, %v3390_v3  ;;  %v2902_v3 = vld [vmem:[%s4368_s3 + $0x1ec] sm:$0xf0] }
 0x18b   :  { %v2795_v59 = vor.u32 %v2902_v3, %v2794_v4  ;;  %v2620_v4 = vld [vmem:[%s4368_s3 + $0x90] sm:$0xf0] }
 0x18c   :  { %2544 = vmatmul.msk.bf16.gmra.mxu0 %vm641_vm1, %v2832_v25  ;;  %v943_v46 = vmul.f32 0.2, %v832_v21  ;;  %v4382_v25 = vld [vmem:[#allocation7_spill] sm:$0xff]  ;;  %v2623_v2 = vor.u32 %v2856_v58, %v2620_v4  ;;  %v404_v4 = vpop.permute.xlu2 %403 }
 0x18e   :  { %1737 = vmatpush.bf16.msrb.mxu2 %v1053_v63  ;;  %v1007_v47 = vmax.f32 %v832_v21, %v943_v46 }
 0x191   :  { %v833_v22 = vpop.f32.mrf.mxu0 }
 0x192   :  { %v834_v29 = vadd.f32 %v833_v22, %v3404_v14  ;;  %1738 = vmatpush.bf16.msrb.mxu2 %v1052_v18  ;;  %v2607_v18 = vor.u32 %v2852_v10, %v2604_v24 }
 0x194   :  { %v944_v19 = vmul.f32 0.2, %v834_v29 }
 0x196   :  { %v1008_v36 = vmax.f32 %v834_v29, %v944_v19  ;;  %1739 = vmatpush.bf16.msrb.mxu2 %v1051_v50  ;;  %v2860_v50 = vld [vmem:[%s4368_s3 + $0xa4] sm:$0xf] }
 0x198   :  { %v3805_v8 = vpack.c.bf16 %v1008_v36, %v1007_v47 }
 0x199   :  { %1690 = vmatmul.bf16.gmra.mxu1 %v2667_v61  ;;  %1730 = vmatmul.bf16.gmra.mxu2 %v2795_v59  ;;  %v836_v53 = vpop.f32.mrf.mxu0  ;;  %v2636_v61 = vld [vmem:[%s4368_s3 + $0xb0] sm:$0xf0] }
 0x19a   :  { %1740 = vmatpush.bf16.msrb.mxu2 %v3698_v38  ;;  %v837_v1 = vadd.f32 %v836_v53, %v3402_v57  ;;  %v2559_v38 = vor.u32 %v2840_v5, %v2556_v62  ;;  %v2639_v47 = vor.u32 %v2860_v50, %v2636_v61 }
 0x19c   :  { %v945_v60 = vmul.f32 0.2, %v837_v1 }
 0x19e   :  { %1741 = vmatpush.bf16.msrb.mxu2 %v3660_v31  ;;  %v1009_v17 = vmax.f32 %v837_v1, %v945_v60 }
 0x1a1   :  { %v838_v14 = vpop.f32.mrf.mxu0 }
 0x1a2   :  { %v839_v48 = vadd.f32 %v838_v14, %v3415_v28  ;;  %1742 = vmatpush.bf16.msrb.mxu2 %v3617_v52  ;;  %v4387_v14 = vld [vmem:[#allocation13_spill] sm:$0xff] }
 0x1a4   :  { %v946_v20 = vmul.f32 0.2, %v839_v48 }
 0x1a6   :  { %v1010_v57 = vmax.f32 %v839_v48, %v946_v20  ;;  %1743 = vmatpush.bf16.msrb.mxu2 %v3558_v44  ;;  %v2572_v44 = vld [vmem:[%s4368_s3 + $0x30] sm:$0xf0]  ;;  %v3881_v1 = vpop.f32.mrf.mxu1  ;;  %v4388_v48 = vld [vmem:[#allocation14_spill] sm:$0xff]  ;;  %v4389_v20 = vld [vmem:[#allocation11_spill] sm:$0xff] }
 0x1a7   :  { %v2575_v7 = vor.u32 %v2844_v9, %v2572_v44 }
 0x1a8   :  { %v3819_v31 = vpack.c.bf16 %v1010_v57, %v1009_v17  ;;  %v4390_v57 = vld [vmem:[#allocation12_spill] sm:$0xff] }
 0x1a9   :  { %v841_v45 = vpop.f32.mrf.mxu0  ;;  %1744 = vmatmul.bf16.vlgmr.msrb.gmra.mxu2 %v2559_v38 }
 0x1aa   :  { %v842_v52 = vadd.f32 %v841_v45, %v3431_v41 }
 0x1ac   :  { %v3821_v28 = vpop.f32.mrf.mxu2  ;;  %v947_v56 = vmul.f32 0.2, %v842_v52 }
 0x1ae   :  { %v1011_v27 = vmax.f32 %v842_v52, %v947_v56  ;;  %v2864_v52 = vld [vmem:[%s4368_s3 + $0xc4] sm:$0xf] }
 0x1b1   :  { %v843_v42 = vpop.f32.mrf.mxu0 }
 0x1b2   :  { %v844_v49 = vadd.f32 %v843_v42, %v3429_v40  ;;  %v2652_v42 = vld [vmem:[%s4368_s3 + $0xd0] sm:$0xf0] }
 0x1b4   :  { %v3831_v23 = vpop.f32.mrf.mxu2  ;;  %v948_v11 = vmul.f32 0.2, %v844_v49 }
 0x1b6   :  { %v1012_v35 = vmax.f32 %v844_v49, %v948_v11  ;;  %v4392_v49 = vld [vmem:[#allocation9_spill] sm:$0xff] }
 0x1b8   :  { %v3833_v33 = vpack.c.bf16 %v1012_v35, %v1011_v27  ;;  %v3896_v27 = vpop.f32.mrf.mxu1  ;;  %v4393_v35 = vld [vmem:[#allocation10_spill] sm:$0xff] }
 0x1b9   :  { %v846_v41 = vpop.f32.mrf.mxu0  ;;  %1749 = vmatmul.bf16.gmra.mxu2 %v2575_v7  ;;  %v2655_v7 = vor.u32 %v2864_v52, %v2652_v42  ;;  %v2841_v52 = vld [vmem:[%s4368_s3 + $0xc] sm:$0xf]  ;;  %v2564_v42 = vld [vmem:[%s4368_s3 + $0x18] sm:$0xf0] }
 0x1ba   :  { %v847_v40 = vadd.f32 %v846_v41, %v3442_v15 }
 0x1bc   :  { %v3835_v37 = vpop.f32.mrf.mxu2  ;;  %v949_v13 = vmul.f32 0.2, %v847_v40 }
 0x1be   :  { %v1013_v43 = vmax.f32 %v847_v40, %v949_v13 }
 0x1c1   :  { %v848_v55 = vpop.f32.mrf.mxu0 }
 0x1c2   :  { %v849_v16 = vadd.f32 %v848_v55, %v4382_v25  ;;  %v4394_v25 = vld [vmem:[#allocation8_spill] sm:$0xff] }
 0x1c4   :  { %v3845_v34 = vpop.f32.mrf.mxu2  ;;  %v950_v54 = vmul.f32 0.2, %v849_v16 }
 0x1c6   :  { %v1014_v32 = vmax.f32 %v849_v16, %v950_v54 }
 0x1c8   :  { %v3847_v51 = vpack.c.bf16 %v1014_v32, %v1013_v43  ;;  %v4395_v43 = vld [vmem:[#allocation6_spill] sm:$0xff] }
 0x1c9   :  { %v851_v15 = vpop.f32.mrf.mxu0  ;;  %1754 = vmatmul.bf16.gmra.mxu2 %v2591_v6 }
 0x1ca   :  { %v852_v32 = vadd.f32 %v851_v15, %v4395_v43 }
 0x1cc   :  { %v3849_v26 = vpop.f32.mrf.mxu2 }
 0x1d1   :  { %v853_v63 = vpop.f32.mrf.mxu0 }
 0x1d2   :  { %v854_v16 = vadd.f32 %v853_v63, %v4394_v25  ;;  %v3903_v63 = vpop.f32.mrf.mxu1  ;;  %v2580_v25 = vld [vmem:[%s4368_s3 + $0x38] sm:$0xf0] }
 0x1d4   :  { %v3857_v21 = vpop.f32.mrf.mxu2 }
 0x1d9   :  { %v856_v12 = vpop.f32.mrf.mxu0  ;;  %1759 = vmatmul.bf16.gmra.mxu2 %v2607_v18 }
 0x1da   :  { %v857_v41 = vadd.f32 %v856_v12, %v4393_v35  ;;  %v2684_v35 = vld [vmem:[%s4368_s3 + $0x110] sm:$0xf0] }
 0x1dc   :  { %v3859_v39 = vpop.f32.mrf.mxu2  ;;  %v953_v10 = vmul.f32 0.2, %v857_v41 }
 0x1e1   :  { %v858_v22 = vpop.f32.mrf.mxu0 }
 0x1e2   :  { %v859_v9 = vadd.f32 %v858_v22, %v4392_v49  ;;  %v952_v22 = vmul.f32 0.2, %v854_v16 }
 0x1e4   :  { %v3867_v3 = vpop.f32.mrf.mxu2  ;;  %v954_v0 = vmul.f32 0.2, %v859_v9  ;;  %v1016_v50 = vmax.f32 %v854_v16, %v952_v22 }
 0x1e5   :  { %4383 = vst [vmem:[#allocation7_spill] sm:$0xff] %v3867_v3 }
 0x1e6   :  { %v1018_v58 = vmax.f32 %v859_v9, %v954_v0  ;;  %v2567_v9 = vor.u32 %v2841_v52, %v2564_v42  ;;  %v1170_v0 = vpop.permute.xlu1 %1169 }
 0x1e9   :  { %v861_v46 = vpop.f32.mrf.mxu0  ;;  %1764 = vmatmul.bf16.gmra.mxu2 %v2623_v2  ;;  %v951_v2 = vmul.f32 0.2, %v852_v32 }
 0x1ea   :  { %v862_v38 = vadd.f32 %v861_v46, %v4389_v20  ;;  %v1017_v46 = vmax.f32 %v857_v41, %v953_v10  ;;  %v2843_v41 = vld [vmem:[%s4368_s3 + $0x14] sm:$0xf0]  ;;  %v2578_v10 = vld [vmem:[%s4368_s3 + $0x28] sm:$0xf] }
 0x1eb   :  { %v1015_v15 = vmax.f32 %v852_v32, %v951_v2  ;;  %v2700_v32 = vld [vmem:[%s4368_s3 + $0x130] sm:$0xf0] }
 0x1ec   :  { %v3869_v29 = vpop.f32.mrf.mxu2  ;;  %v955_v40 = vmul.f32 0.2, %v862_v38  ;;  %v1060_v61 = vpack.c.bf16 %v1018_v58, %v1017_v46 }
 0x1ed   :  { %4384 = vst [vmem:[#allocation15_spill] sm:$0xff] %v3869_v29 }
 0x1ee   :  { %v1019_v24 = vmax.f32 %v862_v38, %v955_v40  ;;  %v1059_v38 = vpack.c.bf16 %v1016_v50, %v1015_v15  ;;  %v2880_v15 = vld [vmem:[%s4368_s3 + $0x144] sm:$0xf] }
 0x1f1   :  { %v863_v19 = vpop.f32.mrf.mxu0 }
 0x1f2   :  { %v864_v5 = vadd.f32 %v863_v19, %v4388_v48  ;;  %v2868_v48 = vld [vmem:[%s4368_s3 + $0xe4] sm:$0xf] }
 0x1f4   :  { %v3877_v59 = vpop.f32.mrf.mxu2  ;;  %v956_v44 = vmul.f32 0.2, %v864_v5 }
 0x1f5   :  { %4385 = vst [vmem:[#allocation16_spill] sm:$0xff] %v3877_v59 }
 0x1f6   :  { %v1020_v30 = vmax.f32 %v864_v5, %v956_v44  ;;  %v2668_v5 = vld [vmem:[%s4368_s3 + $0xf0] sm:$0xf0]  ;;  %v3919_v44 = vpop.f32.mrf.mxu1 }
 0x1f8   :  { %v1061_v12 = vpack.c.bf16 %v1020_v30, %v1019_v24  ;;  %v1657_v30 = vadd.f32 %v3881_v1, %v1170_v0  ;;  %v2847_v1 = vld [vmem:[%s4368_s3 + $0x34] sm:$0xf0]  ;;  %v2857_v0 = vld [vmem:[%s4368_s3 + $0x8c] sm:$0xf] }
 0x1f9   :  { %v866_v36 = vpop.f32.mrf.mxu0  ;;  %1769 = vmatmul.bf16.gmra.mxu2 %v2639_v47  ;;  %v409_v47 = vpop.permute.xlu0 %408  ;;  %v2579_v58 = vor.u32 %v2847_v1, %v2578_v10 }
 0x1fa   :  { %v867_v60 = vadd.f32 %v866_v36, %v4387_v14 }
 0x1fc   :  { %v3879_v53 = vpop.f32.mrf.mxu2  ;;  %v957_v17 = vmul.f32 0.2, %v867_v60 }
 0x1fd   :  { %4386 = vst [vmem:[#allocation17_spill] sm:$0xff] %v3879_v53 }
 0x1fe   :  { %v1021_v55 = vmax.f32 %v867_v60, %v957_v17  ;;  %v2671_v17 = vor.u32 %v2868_v48, %v2668_v5  ;;  %v2851_v48 = vld [vmem:[%s4368_s3 + $0x54] sm:$0xf0] }
 0x201   :  { %v868_v62 = vpop.f32.mrf.mxu0 }
 0x202   :  { %v869_v45 = vadd.f32 %v868_v62, %v4390_v57 }
 0x204   :  { %v3893_v56 = vpop.f32.mrf.mxu2  ;;  %v958_v11 = vmul.f32 0.2, %v869_v45 }
 0x205   :  { %4391 = vst [vmem:[#allocation13_spill] sm:$0xff] %v3893_v56 }
 0x206   :  { %v1022_v13 = vmax.f32 %v869_v45, %v958_v11 }
 0x208   :  { %v1062_v54 = vpack.c.bf16 %v1022_v13, %v1021_v55 }
 0x209   :  { %v871_v6 = vpop.f32.mrf.mxu0  ;;  %1774 = vmatmul.bf16.gmra.mxu2 %v2655_v7  ;;  %v2872_v7 = vld [vmem:[%s4368_s3 + $0x104] sm:$0xf] }
 0x20a   :  { %1825 = vmatpush.bf16.msrb.mxu3 %v1062_v54  ;;  %v872_v19 = vadd.f32 %v871_v6, %v404_v4  ;;  %v2687_v55 = vor.u32 %v2872_v7, %v2684_v35  ;;  %v2596_v4 = vld [vmem:[%s4368_s3 + $0x58] sm:$0xf0]  ;;  %v4001_v35 = vpop.permute.xlu1 %1184 }
 0x20c   :  { %v3901_v18 = vpop.f32.mrf.mxu2  ;;  %v959_v14 = vmul.f32 0.2, %v872_v19 }
 0x20d   :  { %4396 = vst [vmem:[#allocation14_spill] sm:$0xff] %v3901_v18 }
 0x20e   :  { %1826 = vmatpush.bf16.msrb.mxu3 %v1061_v12  ;;  %v1023_v57 = vmax.f32 %v872_v19, %v959_v14  ;;  %v2849_v12 = vld [vmem:[%s4368_s3 + $0x4c] sm:$0xf]  ;;  %v1180_v19 = vpop.permute.xlu0 %1179 }
 0x20f   :  { %v2599_v46 = vor.u32 %v2849_v12, %v2596_v4  ;;  %v1662_v50 = vadd.f32 %v3903_v63, %v1180_v19  ;;  %v2594_v63 = vld [vmem:[%s4368_s3 + $0x48] sm:$0xf]  ;;  %v2888_v12 = vld [vmem:[%s4368_s3 + $0x184] sm:$0xf]  ;;  %v2748_v4 = vld [vmem:[%s4368_s3 + $0x190] sm:$0xf0] }
 0x211   :  { %v873_v36 = vpop.f32.mrf.mxu0 }
 0x212   :  { %v874_v60 = vadd.f32 %v873_v36, %v409_v47  ;;  %1827 = vmatpush.bf16.msrb.mxu3 %v1060_v61  ;;  %v3975_v36 = vpop.permute.xlu2 %1174 }
 0x214   :  { %v3911_v62 = vpop.f32.mrf.mxu2  ;;  %v960_v20 = vmul.f32 0.2, %v874_v60 }
 0x215   :  { %4397 = vst [vmem:[#allocation11_spill] sm:$0xff] %v3911_v62 }
 0x216   :  { %v1024_v45 = vmax.f32 %v874_v60, %v960_v20  ;;  %1828 = vmatpush.bf16.msrb.mxu3 %v1059_v38  ;;  %v2716_v60 = vld [vmem:[%s4368_s3 + $0x150] sm:$0xf0]  ;;  %v2595_v38 = vor.u32 %v2851_v48, %v2594_v63 }
 0x217   :  { %v2719_v20 = vor.u32 %v2880_v15, %v2716_v60  ;;  %v2861_v15 = vld [vmem:[%s4368_s3 + $0xac] sm:$0xf]  ;;  %v2644_v60 = vld [vmem:[%s4368_s3 + $0xb8] sm:$0xf0] }
 0x218   :  { %v1063_v49 = vpack.c.bf16 %v1024_v45, %v1023_v57  ;;  %v2612_v57 = vld [vmem:[%s4368_s3 + $0x78] sm:$0xf0] }
 0x219   :  { %1779 = vmatmul.bf16.gmra.mxu2 %v2671_v17  ;;  %v2853_v17 = vld [vmem:[%s4368_s3 + $0x6c] sm:$0xf] }
 0x21a   :  { %1829 = vmatpush.bf16.msrb.mxu3 %v3847_v51  ;;  %1921 = vmatpush.bf16.msrb.mxu1 %v1063_v49  ;;  %v2562_v51 = vld [vmem:[%s4368_s3 + $0x8] sm:$0xf]  ;;  %v2615_v45 = vor.u32 %v2853_v17, %v2612_v57  ;;  %v1190_v52 = vpop.permute.xlu2 %1189 }
 0x21b   :  { %v2563_v13 = vor.u32 %v2843_v41, %v2562_v51  ;;  %v2884_v51 = vld [vmem:[%s4368_s3 + $0x164] sm:$0xf]  ;;  %v2732_v41 = vld [vmem:[%s4368_s3 + $0x170] sm:$0xf0] }
 0x21c   :  { %v3922_v11 = vpop.f32.mrf.mxu2 }
 0x21d   :  { %4398 = vst [vmem:[#allocation12_spill] sm:$0xff] %v3922_v11  ;;  %1922 = vmatmul.bf16.vlgmr.msrb.gmra.mxu1 %v2567_v9 }
 0x21e   :  { %1830 = vmatpush.bf16.msrb.mxu3 %v3833_v33  ;;  %v1666_v33 = vpop.f32.mrf.mxu1 }
 0x21f   :  { %v1667_v42 = vadd.f32 %v1666_v33, %v1190_v52  ;;  %v2855_v33 = vld [vmem:[%s4368_s3 + $0x74] sm:$0xf0] }
 0x222   :  { %1831 = vmatpush.bf16.msrb.mxu3 %v3819_v31  ;;  %v2845_v31 = vld [vmem:[%s4368_s3 + $0x2c] sm:$0xf]  ;;  %v4049_v63 = vpop.permute.xlu2 %1204 }
 0x223   :  { %v2583_v16 = vor.u32 %v2845_v31, %v2580_v25  ;;  %v2735_v31 = vor.u32 %v2884_v51, %v2732_v41  ;;  %v2642_v51 = vld [vmem:[%s4368_s3 + $0xa8] sm:$0xf] }
 0x224   :  { %v3938_v40 = vpop.f32.mrf.mxu2 }
 0x225   :  { %4399 = vst [vmem:[#allocation9_spill] sm:$0xff] %v3938_v40 }
 0x226   :  { %1832 = vmatpush.bf16.msrb.mxu3 %v3805_v8  ;;  %v3950_v43 = vpop.f32.mrf.mxu1  ;;  %v2876_v8 = vld [vmem:[%s4368_s3 + $0x124] sm:$0xf] }
 0x227   :  { %v2703_v22 = vor.u32 %v2876_v8, %v2700_v32  ;;  %v1200_v8 = vpop.permute.xlu1 %1199 }
 0x229   :  { %1784 = vmatmul.bf16.gmra.mxu2 %v2687_v55  ;;  %1833 = vmatmul.bf16.vlgmr.msrb.gmra.mxu3 %v2563_v13  ;;  %v2610_v55 = vld [vmem:[%s4368_s3 + $0x68] sm:$0xf] }
 0x22a   :  { %v2611_v25 = vor.u32 %v2855_v33, %v2610_v55  ;;  %v1220_v41 = vpop.permute.xlu2 %1219 }
 0x22c   :  { %v1745_v54 = vpop.f32.mrf.mxu2 }
 0x22d   :  { %v3948_v6 = vadd.f32 %v1745_v54, %v1657_v30  ;;  %1927 = vmatmul.bf16.gmra.mxu1 %v2583_v16  ;;  %v2628_v30 = vld [vmem:[%s4368_s3 + $0x98] sm:$0xf0] }
 0x22e   :  { %v1671_v2 = vpop.f32.mrf.mxu1  ;;  %v2631_v54 = vor.u32 %v2857_v0, %v2628_v30 }
 0x22f   :  { %v1672_v32 = vadd.f32 %v1671_v2, %v1200_v8  ;;  %v2859_v2 = vld [vmem:[%s4368_s3 + $0x94] sm:$0xf0]  ;;  %v4053_v17 = vpop.permute.xlu1 %1214  ;;  %v2660_v8 = vld [vmem:[%s4368_s3 + $0xd8] sm:$0xf0] }
 0x234   :  { %v3964_v24 = vpop.f32.mrf.mxu2 }
 0x236   :  { %v3980_v14 = vpop.f32.mrf.mxu1 }
 0x239   :  { %1789 = vmatmul.bf16.gmra.mxu2 %v2703_v22  ;;  %1838 = vmatmul.bf16.gmra.mxu3 %v2579_v58  ;;  %v4027_v22 = vpop.permute.xlu0 %1194 }
 0x23c   :  { %v1750_v61 = vpop.f32.mrf.mxu2 }
 0x23d   :  { %v3973_v47 = vadd.f32 %v1750_v61, %v1662_v50  ;;  %1932 = vmatmul.bf16.gmra.mxu1 %v2599_v46  ;;  %v2626_v46 = vld [vmem:[%s4368_s3 + $0x88] sm:$0xf]  ;;  %v2751_v50 = vor.u32 %v2888_v12, %v2748_v4  ;;  %v4079_v4 = vpop.permute.xlu2 %1234 }
 0x23e   :  { %v1676_v49 = vpop.f32.mrf.mxu1  ;;  %v2627_v61 = vor.u32 %v2859_v2, %v2626_v46 }
 0x241   :  { %v1210_v48 = vpop.permute.xlu0 %1209 }
 0x242   :  { %v1677_v57 = vadd.f32 %v1676_v49, %v1210_v48  ;;  %v2863_v49 = vld [vmem:[%s4368_s3 + $0xb4] sm:$0xf0] }
 0x243   :  { %v2643_v30 = vor.u32 %v2863_v49, %v2642_v51  ;;  %v2867_v48 = vld [vmem:[%s4368_s3 + $0xd4] sm:$0xf0] }
 0x244   :  { %v3991_v5 = vpop.f32.mrf.mxu2 }
 0x245   :  { %v1250_v51 = vpop.permute.xlu2 %1249 }
 0x246   :  { %v4017_v16 = vpop.f32.mrf.mxu1  ;;  %v1697_v53 = vadd.f32 %v3821_v28, %v1250_v51  ;;  %v2706_v28 = vld [vmem:[%s4368_s3 + $0x128] sm:$0xf] }
 0x249   :  { %1794 = vmatmul.bf16.gmra.mxu2 %v2719_v20  ;;  %1843 = vmatmul.bf16.gmra.mxu3 %v2595_v38  ;;  %v2647_v20 = vor.u32 %v2861_v15, %v2644_v60  ;;  %v4069_v55 = vpop.permute.xlu0 %1224  ;;  %v2896_v15 = vld [vmem:[%s4368_s3 + $0x1c4] sm:$0xf]  ;;  %v2780_v60 = vld [vmem:[%s4368_s3 + $0x1d0] sm:$0xf0] }
 0x24c   :  { %v1755_v9 = vpop.f32.mrf.mxu2 }
 0x24d   :  { %v3999_v7 = vadd.f32 %v1755_v9, %v1667_v42  ;;  %1937 = vmatmul.bf16.gmra.mxu1 %v2615_v45  ;;  %v2892_v42 = vld [vmem:[%s4368_s3 + $0x1a4] sm:$0xf]  ;;  %v2764_v9 = vld [vmem:[%s4368_s3 + $0x1b0] sm:$0xf0] }
 0x24e   :  { %v1681_v58 = vpop.f32.mrf.mxu1  ;;  %v2767_v0 = vor.u32 %v2892_v42, %v2764_v9  ;;  %v2869_v42 = vld [vmem:[%s4368_s3 + $0xec] sm:$0xf]  ;;  %v2676_v9 = vld [vmem:[%s4368_s3 + $0xf8] sm:$0xf0] }
 0x251   :  { %v1240_v2 = vpop.permute.xlu0 %1239 }
 0x254   :  { %v4015_v13 = vpop.f32.mrf.mxu2 }
 0x256   :  { %v4051_v38 = vpop.f32.mrf.mxu1 }
 0x259   :  { %1799 = vmatmul.bf16.gmra.mxu2 %v2735_v31  ;;  %1848 = vmatmul.bf16.gmra.mxu3 %v2611_v25  ;;  %v1230_v25 = vpop.permute.xlu1 %1229  ;;  %v1255_v49 = vpop.permute.xlu0 %1254 }
 0x25c   :  { %v1760_v10 = vpop.f32.mrf.mxu2 }
 0x25d   :  { %v4025_v1 = vadd.f32 %v1760_v10, %v1672_v32  ;;  %1942 = vmatmul.bf16.gmra.mxu1 %v2631_v54  ;;  %v2865_v54 = vld [vmem:[%s4368_s3 + $0xcc] sm:$0xf]  ;;  %v1682_v10 = vadd.f32 %v1681_v58, %v1220_v41  ;;  %v2658_v58 = vld [vmem:[%s4368_s3 + $0xc8] sm:$0xf] }
 0x25e   :  { %v1686_v33 = vpop.f32.mrf.mxu1  ;;  %v2663_v32 = vor.u32 %v2865_v54, %v2660_v8 }
 0x25f   :  { %v1687_v54 = vadd.f32 %v1686_v33, %v1230_v25  ;;  %v2674_v33 = vld [vmem:[%s4368_s3 + $0xe8] sm:$0xf]  ;;  %v2871_v25 = vld [vmem:[%s4368_s3 + $0xf4] sm:$0xf0] }
 0x264   :  { %v4041_v19 = vpop.f32.mrf.mxu2 }
 0x269   :  { %1804 = vmatmul.bf16.gmra.mxu2 %v2751_v50  ;;  %1853 = vmatmul.bf16.gmra.mxu3 %v2627_v61  ;;  %v4083_v50 = vpop.f32.mrf.mxu1  ;;  %v4085_v61 = vpop.permute.xlu1 %1244 }
 0x26c   :  { %v1765_v45 = vpop.f32.mrf.mxu2 }
 0x26d   :  { %v4055_v52 = vadd.f32 %v1765_v45, %v1677_v57  ;;  %1947 = vmatmul.bf16.gmra.mxu1 %v2647_v20  ;;  %v2783_v57 = vor.u32 %v2896_v15, %v2780_v60  ;;  %v2659_v45 = vor.u32 %v2867_v48, %v2658_v58  ;;  %v4116_v15 = vpop.permute.xlu0 %1269  ;;  %v2796_v58 = vld [vmem:[%s4368_s3 + $0x1f0] sm:$0xf0] }
 0x271   :  { %v1691_v41 = vpop.f32.mrf.mxu1 }
 0x272   :  { %v1692_v11 = vadd.f32 %v1691_v41, %v1240_v2 }
 0x274   :  { %v4071_v31 = vpop.f32.mrf.mxu2 }
 0x275   :  { %v4141_v62 = vpop.permute.xlu0 %1284 }
 0x276   :  { %4400 = vst [vmem:[#allocation10_spill] sm:$0xff] %v4141_v62 }
 0x279   :  { %1809 = vmatmul.bf16.gmra.mxu2 %v2767_v0  ;;  %1858 = vmatmul.bf16.gmra.mxu3 %v2643_v30  ;;  %v4107_v0 = vpop.permute.xlu1 %1259  ;;  %v2679_v30 = vor.u32 %v2869_v42, %v2676_v9  ;;  %v4118_v60 = vpop.f32.mrf.mxu1  ;;  %v2675_v42 = vor.u32 %v2871_v25, %v2674_v33  ;;  %v2873_v9 = vld [vmem:[%s4368_s3 + $0x10c] sm:$0xf]  ;;  %v2690_v33 = vld [vmem:[%s4368_s3 + $0x108] sm:$0xf]  ;;  %v2875_v25 = vld [vmem:[%s4368_s3 + $0x114] sm:$0xf0] }
 0x27a   :  { %v2691_v41 = vor.u32 %v2875_v25, %v2690_v33 }
 0x27c   :  { %v1770_v12 = vpop.f32.mrf.mxu2 }
 0x27d   :  { %v4081_v46 = vadd.f32 %v1770_v12, %v1682_v10  ;;  %1952 = vmatmul.bf16.gmra.mxu1 %v2663_v32  ;;  %v4111_v10 = vpop.permute.xlu2 %1264  ;;  %v2900_v12 = vld [vmem:[%s4368_s3 + $0x1e4] sm:$0xf] }
 0x281   :  { %v4129_v48 = vpop.permute.xlu1 %1274 }
 0x284   :  { %v4099_v20 = vpop.f32.mrf.mxu2 }
 0x285   :  { %v4139_v40 = vpop.permute.xlu2 %1279 }
 0x289   :  { %1814 = vmatmul.bf16.gmra.mxu2 %v2783_v57  ;;  %1863 = vmatmul.bf16.gmra.mxu3 %v2659_v45  ;;  %v2799_v45 = vor.u32 %v2900_v12, %v2796_v58  ;;  %v4143_v12 = vpop.permute.xlu1 %1289 }
 0x28a   :  { %4401 = vst [vmem:[#allocation8_spill] sm:$0xff] %v4143_v12 }
 0x28c   :  { %v1775_v8 = vpop.f32.mrf.mxu2 }
 0x28d   :  { %v4109_v32 = vadd.f32 %v1775_v8, %v1687_v54  ;;  %1957 = vmatmul.bf16.gmra.mxu1 %v2679_v30  ;;  %v2692_v30 = vld [vmem:[%s4368_s3 + $0x118] sm:$0xf0]  ;;  %v4155_v2 = vpop.permute.xlu2 %1294 }
 0x28e   :  { %v2695_v54 = vor.u32 %v2873_v9, %v2692_v30  ;;  %4402 = vst [vmem:[#allocation6_spill] sm:$0xff] %v4155_v2  ;;  %v4157_v9 = vpop.permute.xlu0 %1299 }
 0x28f   :  { %4403 = vst [vmem:[#allocation18_spill] sm:$0xff] %v4157_v9 }
 0x291   :  { %v4165_v30 = vpop.permute.xlu1 %1304 }
 0x292   :  { %4404 = vst [vmem:[#allocation19_spill] sm:$0xff] %v4165_v30 }
 0x294   :  { %v4131_v57 = vpop.f32.mrf.mxu2 }
 0x295   :  { %v4171_v9 = vpop.permute.xlu2 %1309 }
 0x296   :  { %4405 = vst [vmem:[#allocation20_spill] sm:$0xff] %v4171_v9  ;;  %v4173_v12 = vpop.permute.xlu0 %1314 }
 0x297   :  { %4406 = vst [vmem:[#allocation21_spill] sm:$0xff] %v4173_v12 }
 0x299   :  { %1819 = vmatmul.bf16.gmra.mxu2 %v2799_v45  ;;  %1868 = vmatmul.bf16.gmra.mxu3 %v2675_v42  ;;  %v4175_v3 = vpop.permute.xlu1 %1319 }
 0x29a   :  { %v1923_v8 = vpop.f32.mrf.mxu1  ;;  %4407 = vst [vmem:[#allocation22_spill] sm:$0xff] %v4175_v3 }
 0x29c   :  { %v1780_v18 = vpop.f32.mrf.mxu2 }
 0x29d   :  { %v4145_v58 = vadd.f32 %v1780_v18, %v1692_v11  ;;  %1962 = vmatmul.bf16.gmra.mxu1 %v2695_v54  ;;  %v2877_v18 = vld [vmem:[%s4368_s3 + $0x12c] sm:$0xf]  ;;  %v2708_v11 = vld [vmem:[%s4368_s3 + $0x138] sm:$0xf0] }
 0x29e   :  { %v2711_v54 = vor.u32 %v2877_v18, %v2708_v11 }
 0x2a2   :  { %v1925_v45 = vpop.f32.mrf.mxu1 }
 0x2a4   :  { %v4153_v42 = vpop.f32.mrf.mxu2 }
 0x2a9   :  { %1873 = vmatmul.bf16.gmra.mxu3 %v2691_v41  ;;  %v1659_v41 = vadd.f32 %v3896_v27, %v3975_v36  ;;  %v2881_v36 = vld [vmem:[%s4368_s3 + $0x14c] sm:$0xf] }
 0x2aa   :  { %v1928_v56 = vpop.f32.mrf.mxu1 }
 0x2ab   :  { %v1748_v51 = vadd.f32 %v3964_v24, %v1659_v41  ;;  %v2102_v41 = vpop.permute.xlu0 %2101 }
 0x2ac   :  { %v1785_v59 = vpop.f32.mrf.mxu2  ;;  %v1834_v2 = vpop.f32.mrf.mxu3 }
 0x2ad   :  { %v4168_v33 = vadd.f32 %v1785_v59, %v1697_v53  ;;  %v1835_v25 = vadd.f32 %v1834_v2, %v3948_v6  ;;  %1967 = vmatmul.bf16.gmra.mxu1 %v2711_v54  ;;  %v2879_v59 = vld [vmem:[%s4368_s3 + $0x134] sm:$0xf0]  ;;  %v1699_v6 = vadd.f32 %v3831_v23, %v1255_v49  ;;  %v4195_v23 = vpop.permute.xlu2 %1324 }
 0x2ae   :  { %v2707_v27 = vor.u32 %v2879_v59, %v2706_v28  ;;  %v1702_v28 = vadd.f32 %v3835_v37, %v4107_v0  ;;  %v1664_v37 = vadd.f32 %v3919_v44, %v4001_v35  ;;  %v2722_v0 = vld [vmem:[%s4368_s3 + $0x148] sm:$0xf] }
 0x2af   :  { %v1924_v29 = vadd.f32 %v1923_v8, %v1835_v25  ;;  %v2724_v25 = vld [vmem:[%s4368_s3 + $0x158] sm:$0xf0] }
 0x2b0   :  { %v2727_v49 = vor.u32 %v2881_v36, %v2724_v25  ;;  %v1704_v36 = vadd.f32 %v3845_v34, %v4111_v10 }
 0x2b1   :  { %v2003_v8 = vmul.f32 0.2, %v1924_v29 }
 0x2b2   :  { %v1930_v53 = vpop.f32.mrf.mxu1 }
 0x2b3   :  { %v2035_v3 = vmax.f32 %v1924_v29, %v2003_v8 }
 0x2b4   :  { %v1787_v2 = vpop.f32.mrf.mxu2  ;;  %v1836_v18 = vpop.f32.mrf.mxu3 }
 0x2b5   :  { %v4187_v11 = vadd.f32 %v1787_v2, %v1699_v6  ;;  %v1837_v54 = vadd.f32 %v1836_v18, %v1748_v51  ;;  %v2107_v2 = vpop.permute.xlu1 %2106  ;;  %v2259_v59 = vmul.f32 %v2102_v41, %v2035_v3 }
 0x2b7   :  { %v1926_v12 = vadd.f32 %v1925_v45, %v1837_v54  ;;  %v2292_v45 = vsel %vm2291_vm2, %v2259_v59, 0.0 }
 0x2b9   :  { %v2004_v24 = vmul.f32 0.2, %v1926_v12  ;;  %1878 = vmatmul.bf16.gmra.mxu3 %v2707_v27 }
 0x2ba   :  { %v1933_v6 = vpop.f32.mrf.mxu1 }
 0x2bb   :  { %v2036_v51 = vmax.f32 %v1926_v12, %v2004_v24  ;;  %v2883_v12 = vld [vmem:[%s4368_s3 + $0x154] sm:$0xf0] }
 0x2bc   :  { %v1790_v18 = vpop.f32.mrf.mxu2  ;;  %v1839_v9 = vpop.f32.mrf.mxu3  ;;  %v2723_v41 = vor.u32 %v2883_v12, %v2722_v0 }
 0x2bd   :  { %v2260_v30 = vmul.f32 %v2107_v2, %v2036_v51  ;;  %v4199_v62 = vadd.f32 %v1790_v18, %v1702_v28  ;;  %v1840_v29 = vadd.f32 %v1839_v9, %v3973_v47  ;;  %1972 = vmatmul.bf16.gmra.mxu1 %v2727_v49  ;;  %v2112_v9 = vpop.permute.xlu2 %2111  ;;  %v2885_v2 = vld [vmem:[%s4368_s3 + $0x16c] sm:$0xf]  ;;  %v2740_v28 = vld [vmem:[%s4368_s3 + $0x178] sm:$0xf0] }
 0x2be   :  { %v2743_v51 = vor.u32 %v2885_v2, %v2740_v28 }
 0x2bf   :  { %v2293_v8 = vsel %vm2291_vm2, %v2260_v30, 0.0  ;;  %v1929_v54 = vadd.f32 %v1928_v56, %v1840_v29  ;;  %v1753_v56 = vadd.f32 %v3991_v5, %v1664_v37  ;;  %v2117_v29 = vpop.permute.xlu0 %2116 }
 0x2c0   :  { %v2294_v27 = vadd.f32 %v2293_v8, %v2292_v45  ;;  %v1707_v45 = vadd.f32 %v3849_v26, %v4116_v15  ;;  %v2738_v26 = vld [vmem:[%s4368_s3 + $0x168] sm:$0xf]  ;;  %v2887_v15 = vld [vmem:[%s4368_s3 + $0x174] sm:$0xf0] }
 0x2c1   :  { %v2005_v3 = vmul.f32 0.2, %v1929_v54 }
 0x2c2   :  { %v1935_v47 = vpop.f32.mrf.mxu1 }
 0x2c3   :  { %v2037_v30 = vmax.f32 %v1929_v54, %v2005_v3 }
 0x2c4   :  { %v1792_v25 = vpop.f32.mrf.mxu2  ;;  %v1841_v24 = vpop.f32.mrf.mxu3 }
 0x2c5   :  { %v2261_v44 = vmul.f32 %v2112_v9, %v2037_v30  ;;  %v4215_v35 = vadd.f32 %v1792_v25, %v1704_v36  ;;  %v1842_v49 = vadd.f32 %v1841_v24, %v1753_v56  ;;  %v1669_v36 = vadd.f32 %v3950_v43, %v4027_v22  ;;  %v2122_v24 = vpop.permute.xlu1 %2121  ;;  %v2889_v43 = vld [vmem:[%s4368_s3 + $0x18c] sm:$0xf]  ;;  %v2756_v22 = vld [vmem:[%s4368_s3 + $0x198] sm:$0xf0] }
 0x2c7   :  { %v2295_v34 = vsel %vm2291_vm2, %v2261_v44, 0.0  ;;  %v1931_v10 = vadd.f32 %v1930_v53, %v1842_v49 }
 0x2c8   :  { %v2296_v5 = vadd.f32 %v2295_v34, %v2294_v27 }
 0x2c9   :  { %v2006_v59 = vmul.f32 0.2, %v1931_v10  ;;  %1883 = vmatmul.bf16.gmra.mxu3 %v2723_v41  ;;  %v2739_v41 = vor.u32 %v2887_v15, %v2738_v26 }
 0x2ca   :  { %v1938_v18 = vpop.f32.mrf.mxu1 }
 0x2cb   :  { %v2038_v8 = vmax.f32 %v1931_v10, %v2006_v59 }
 0x2cc   :  { %v1795_v54 = vpop.f32.mrf.mxu2  ;;  %v1844_v37 = vpop.f32.mrf.mxu3 }
 0x2cd   :  { %v2262_v3 = vmul.f32 %v2117_v29, %v2038_v8  ;;  %v4226_v0 = vadd.f32 %v1795_v54, %v1707_v45  ;;  %v1845_v12 = vadd.f32 %v1844_v37, %v3999_v7  ;;  %1977 = vmatmul.bf16.gmra.mxu1 %v2743_v51  ;;  %v1758_v7 = vadd.f32 %v4015_v13, %v1669_v36  ;;  %v2127_v51 = vpop.permute.xlu2 %2126 }
 0x2ce   :  { %v2759_v13 = vor.u32 %v2889_v43, %v2756_v22  ;;  %v2137_v43 = vpop.permute.xlu1 %2136 }
 0x2cf   :  { %v2297_v53 = vsel %vm2291_vm2, %v2262_v3, 0.0  ;;  %v1934_v27 = vadd.f32 %v1933_v6, %v1845_v12  ;;  %v1674_v12 = vadd.f32 %v3980_v14, %v4049_v63  ;;  %v2893_v14 = vld [vmem:[%s4368_s3 + $0x1ac] sm:$0xf]  ;;  %v2772_v63 = vld [vmem:[%s4368_s3 + $0x1b8] sm:$0xf0] }
 0x2d0   :  { %v2298_v9 = vadd.f32 %v2297_v53, %v2296_v5  ;;  %v2754_v53 = vld [vmem:[%s4368_s3 + $0x188] sm:$0xf] }
 0x2d1   :  { %v2007_v56 = vmul.f32 0.2, %v1934_v27 }
 0x2d2   :  { %v1940_v30 = vpop.f32.mrf.mxu1 }
 0x2d3   :  { %v2039_v25 = vmax.f32 %v1934_v27, %v2007_v56  ;;  %v2891_v27 = vld [vmem:[%s4368_s3 + $0x194] sm:$0xf0]  ;;  %v2132_v56 = vpop.permute.xlu0 %2131 }
 0x2d4   :  { %v1846_v44 = vpop.f32.mrf.mxu3 }
 0x2d5   :  { %v2263_v6 = vmul.f32 %v2122_v24, %v2039_v25  ;;  %v1847_v49 = vadd.f32 %v1846_v44, %v1758_v7  ;;  %v2755_v7 = vor.u32 %v2891_v27, %v2754_v53 }
 0x2d7   :  { %v2299_v2 = vsel %vm2291_vm2, %v2263_v6, 0.0  ;;  %v1936_v28 = vadd.f32 %v1935_v47, %v1847_v49 }
 0x2d8   :  { %v2300_v34 = vadd.f32 %v2299_v2, %v2298_v9 }
 0x2d9   :  { %v2008_v10 = vmul.f32 0.2, %v1936_v28  ;;  %1888 = vmatmul.bf16.gmra.mxu3 %v2739_v41 }
 0x2da   :  { %v1943_v5 = vpop.f32.mrf.mxu1 }
 0x2db   :  { %v2040_v59 = vmax.f32 %v1936_v28, %v2008_v10 }
 0x2dc   :  { %v1849_v29 = vpop.f32.mrf.mxu3 }
 0x2dd   :  { %v2264_v45 = vmul.f32 %v2127_v51, %v2040_v59  ;;  %v1850_v8 = vadd.f32 %v1849_v29, %v4025_v1  ;;  %1982 = vmatmul.bf16.gmra.mxu1 %v2759_v13  ;;  %v1763_v1 = vadd.f32 %v4041_v19, %v1674_v12  ;;  %v2775_v19 = vor.u32 %v2893_v14, %v2772_v63  ;;  %v2770_v51 = vld [vmem:[%s4368_s3 + $0x1a8] sm:$0xf]  ;;  %v2895_v29 = vld [vmem:[%s4368_s3 + $0x1b4] sm:$0xf0] }
 0x2de   :  { %v1679_v59 = vadd.f32 %v4017_v16, %v4053_v17  ;;  %v2771_v12 = vor.u32 %v2895_v29, %v2770_v51  ;;  %v2897_v16 = vld [vmem:[%s4368_s3 + $0x1cc] sm:$0xf]  ;;  %v2788_v17 = vld [vmem:[%s4368_s3 + $0x1d8] sm:$0xf0] }
 0x2df   :  { %v2301_v54 = vsel %vm2291_vm2, %v2264_v45, 0.0  ;;  %v1939_v37 = vadd.f32 %v1938_v18, %v1850_v8 }
 0x2e0   :  { %v2302_v3 = vadd.f32 %v2301_v54, %v2300_v34  ;;  %v2142_v54 = vpop.permute.xlu2 %2141 }
 0x2e1   :  { %v2009_v47 = vmul.f32 0.2, %v1939_v37 }
 0x2e2   :  { %v1945_v9 = vpop.f32.mrf.mxu1 }
 0x2e3   :  { %v2041_v36 = vmax.f32 %v1939_v37, %v2009_v47 }
 0x2e4   :  { %v1851_v26 = vpop.f32.mrf.mxu3 }
 0x2e5   :  { %v2265_v18 = vmul.f32 %v2132_v56, %v2041_v36  ;;  %v1852_v15 = vadd.f32 %v1851_v26, %v1763_v1  ;;  %v2147_v26 = vpop.permute.xlu0 %2146 }
 0x2e7   :  { %v2303_v25 = vsel %vm2291_vm2, %v2265_v18, 0.0  ;;  %v1941_v24 = vadd.f32 %v1940_v30, %v1852_v15 }
 0x2e8   :  { %v2304_v44 = vadd.f32 %v2303_v25, %v2302_v3  ;;  %v2157_v29 = vpop.permute.xlu2 %2156 }
 0x2e9   :  { %v2010_v6 = vmul.f32 0.2, %v1941_v24  ;;  %1893 = vmatmul.bf16.gmra.mxu3 %v2755_v7 }
 0x2ea   :  { %v1948_v49 = vpop.f32.mrf.mxu1 }
 0x2eb   :  { %v2042_v41 = vmax.f32 %v1941_v24, %v2010_v6  ;;  %v1684_v24 = vadd.f32 %v4051_v38, %v4069_v55  ;;  %v2899_v6 = vld [vmem:[%s4368_s3 + $0x1d4] sm:$0xf0]  ;;  %v2901_v38 = vld [vmem:[%s4368_s3 + $0x1ec] sm:$0xf]  ;;  %v2804_v55 = vld [vmem:[%s4368_s3 + $0x1f8] sm:$0xf0] }
 0x2ec   :  { %v1854_v22 = vpop.f32.mrf.mxu3 }
 0x2ed   :  { %v2266_v2 = vmul.f32 %v2137_v43, %v2042_v41  ;;  %v1855_v28 = vadd.f32 %v1854_v22, %v4055_v52  ;;  %1987 = vmatmul.bf16.gmra.mxu1 %v2775_v19  ;;  %v1768_v52 = vadd.f32 %v4071_v31, %v1679_v59  ;;  %v2791_v31 = vor.u32 %v2897_v16, %v2788_v17  ;;  %v2152_v43 = vpop.permute.xlu1 %2151  ;;  %v2802_v16 = vld [vmem:[%s4368_s3 + $0x1e8] sm:$0xf]  ;;  %v2903_v17 = vld [vmem:[%s4368_s3 + $0x1f4] sm:$0xf0] }
 0x2ef   :  { %v2305_v34 = vsel %vm2291_vm2, %v2266_v2, 0.0  ;;  %v1944_v10 = vadd.f32 %v1943_v5, %v1855_v28 }
 0x2f0   :  { %v2306_v13 = vadd.f32 %v2305_v34, %v2304_v44  ;;  %v2786_v44 = vld [vmem:[%s4368_s3 + $0x1c8] sm:$0xf]  ;;  %s2949_s3 = smov [#allocation3]  }
 0x2f1   :  { %v2011_v30 = vmul.f32 0.2, %v1944_v10  ;;  %v2787_v28 = vor.u32 %v2899_v6, %v2786_v44  ;;  %v1694_v6 = vadd.f32 %v4118_v60, %v4085_v61  ;;  %s2381_s15 = sshll.u32 %s2949_s3, 4  ;;  %s2382_s15 = int_to_ptr.vmem [resolvable:$true] %s2381_s15 }
 0x2f2   :  { %v1950_v45 = vpop.f32.mrf.mxu1 }
 0x2f3   :  { %v2043_v8 = vmax.f32 %v1944_v10, %v2011_v30 }
 0x2f4   :  { %v1856_v37 = vpop.f32.mrf.mxu3 }
 0x2f5   :  { %v2267_v5 = vmul.f32 %v2142_v54, %v2043_v8  ;;  %v1857_v3 = vadd.f32 %v1856_v37, %v1768_v52 }
 0x2f7   :  { %v2307_v47 = vsel %vm2291_vm2, %v2267_v5, 0.0  ;;  %v1946_v53 = vadd.f32 %v1945_v9, %v1857_v3 }
 0x2f8   :  { %v2308_v27 = vadd.f32 %v2307_v47, %v2306_v13 }
 0x2f9   :  { %v2012_v1 = vmul.f32 0.2, %v1946_v53  ;;  %1898 = vmatmul.bf16.gmra.mxu3 %v2771_v12  ;;  %v1689_v12 = vadd.f32 %v4083_v50, %v4079_v4 }
 0x2fa   :  { %v1953_v36 = vpop.f32.mrf.mxu1 }
 0x2fb   :  { %v2044_v56 = vmax.f32 %v1946_v53, %v2012_v1 }
 0x2fc   :  { %v1859_v18 = vpop.f32.mrf.mxu3 }
 0x2fd   :  { %v2268_v15 = vmul.f32 %v2147_v26, %v2044_v56  ;;  %v1860_v7 = vadd.f32 %v1859_v18, %v4081_v46  ;;  %1992 = vmatmul.bf16.gmra.mxu1 %v2791_v31  ;;  %v1773_v46 = vadd.f32 %v4099_v20, %v1684_v24  ;;  %v2807_v20 = vor.u32 %v2901_v38, %v2804_v55 }
 0x2fe   :  { %v2803_v56 = vor.u32 %v2903_v17, %v2802_v16 }
 0x2ff   :  { %v2309_v14 = vsel %vm2291_vm2, %v2268_v15, 0.0  ;;  %v1949_v63 = vadd.f32 %v1948_v49, %v1860_v7 }
 0x300   :  { %v2310_v25 = vadd.f32 %v2309_v14, %v2308_v27  ;;  %v2162_v27 = vpop.permute.xlu0 %2161  ;;  %v2167_v14 = vpop.permute.xlu1 %2166 }
 0x301   :  { %v2013_v9 = vmul.f32 0.2, %v1949_v63 }
 0x302   :  { %v1955_v19 = vpop.f32.mrf.mxu1 }
 0x303   :  { %v2045_v41 = vmax.f32 %v1949_v63, %v2013_v9 }
 0x304   :  { %v1861_v22 = vpop.f32.mrf.mxu3 }
 0x305   :  { %v2269_v49 = vmul.f32 %v2152_v43, %v2045_v41  ;;  %v1862_v2 = vadd.f32 %v1861_v22, %v1773_v46  ;;  %v2172_v22 = vpop.permute.xlu2 %2171 }
 0x307   :  { %v2311_v34 = vsel %vm2291_vm2, %v2269_v49, 0.0  ;;  %v1951_v10 = vadd.f32 %v1950_v45, %v1862_v2 }
 0x308   :  { %v2312_v13 = vadd.f32 %v2311_v34, %v2310_v25 }
 0x309   :  { %v2014_v59 = vmul.f32 0.2, %v1951_v10  ;;  %1903 = vmatmul.bf16.gmra.mxu3 %v2787_v28 }
 0x30a   :  { %v1958_v30 = vpop.f32.mrf.mxu1 }
 0x30b   :  { %v2046_v51 = vmax.f32 %v1951_v10, %v2014_v59  ;;  %v2177_v59 = vpop.permute.xlu0 %2176 }
 0x30c   :  { %v1864_v52 = vpop.f32.mrf.mxu3 }
 0x30d   :  { %v2270_v8 = vmul.f32 %v2157_v29, %v2046_v51  ;;  %v1865_v54 = vadd.f32 %v1864_v52, %v4109_v32  ;;  %1997 = vmatmul.bf16.gmra.mxu1 %v2807_v20  ;;  %v1778_v32 = vadd.f32 %v4131_v57, %v1689_v12 }
 0x30f   :  { %v2313_v37 = vsel %vm2291_vm2, %v2270_v8, 0.0  ;;  %v1954_v5 = vadd.f32 %v1953_v36, %v1865_v54  ;;  %v2182_v54 = vpop.permute.xlu1 %2181 }
 0x310   :  { %v2314_v3 = vadd.f32 %v2313_v37, %v2312_v13 }
 0x311   :  { %v2015_v45 = vmul.f32 0.2, %v1954_v5 }
 0x312   :  { %v1960_v47 = vpop.f32.mrf.mxu1 }
 0x313   :  { %v2047_v53 = vmax.f32 %v1954_v5, %v2015_v45 }
 0x314   :  { %v1866_v1 = vpop.f32.mrf.mxu3 }
 0x315   :  { %v2271_v31 = vmul.f32 %v2162_v27, %v2047_v53  ;;  %v1867_v36 = vadd.f32 %v1866_v1, %v1778_v32  ;;  %v2187_v32 = vpop.permute.xlu2 %2186  ;;  %v1797_v53 = vpop.f32.mrf.mxu2 }
 0x317   :  { %v2315_v4 = vsel %vm2291_vm2, %v2271_v31, 0.0  ;;  %v1956_v50 = vadd.f32 %v1955_v19, %v1867_v36  ;;  %v1783_v19 = vadd.f32 %v4153_v42, %v1694_v6 }
 0x318   :  { %v2316_v26 = vadd.f32 %v2315_v4, %v2314_v3 }
 0x319   :  { %v2016_v18 = vmul.f32 0.2, %v1956_v50  ;;  %1908 = vmatmul.bf16.gmra.mxu3 %v2803_v56 }
 0x31a   :  { %v1963_v15 = vpop.f32.mrf.mxu1 }
 0x31b   :  { %v2048_v7 = vmax.f32 %v1956_v50, %v2016_v18  ;;  %v2192_v18 = vpop.permute.xlu0 %2191 }
 0x31c   :  { %v1869_v63 = vpop.f32.mrf.mxu3 }
 0x31d   :  { %v2272_v25 = vmul.f32 %v2167_v14, %v2048_v7  ;;  %v1870_v24 = vadd.f32 %v1869_v63, %v4145_v58  ;;  %v1800_v63 = vpop.f32.mrf.mxu2 }
 0x31f   :  { %v2317_v57 = vsel %vm2291_vm2, %v2272_v25, 0.0  ;;  %v1959_v9 = vadd.f32 %v1958_v30, %v1870_v24 }
 0x320   :  { %v2318_v44 = vadd.f32 %v2317_v57, %v2316_v26 }
 0x321   :  { %v2017_v46 = vmul.f32 0.2, %v1959_v9 }
 0x322   :  { %v1965_v41 = vpop.f32.mrf.mxu1 }
 0x323   :  { %v2049_v43 = vmax.f32 %v1959_v9, %v2017_v46 }
 0x324   :  { %v1871_v49 = vpop.f32.mrf.mxu3 }
 0x325   :  { %v2273_v2 = vmul.f32 %v2172_v22, %v2049_v43  ;;  %v1872_v28 = vadd.f32 %v1871_v49, %v1783_v19  ;;  %v1802_v49 = vpop.f32.mrf.mxu2 }
 0x327   :  { %v2319_v38 = vsel %vm2291_vm2, %v2273_v2, 0.0  ;;  %v1961_v55 = vadd.f32 %v1960_v47, %v1872_v28 }
 0x328   :  { %v2320_v58 = vadd.f32 %v2319_v38, %v2318_v44  ;;  %v2197_v44 = vpop.permute.xlu1 %2196 }
 0x329   :  { %v2018_v34 = vmul.f32 0.2, %v1961_v55 }
 0x32a   :  { %v1968_v10 = vpop.f32.mrf.mxu1 }
 0x32b   :  { %v2050_v13 = vmax.f32 %v1961_v55, %v2018_v34 }
 0x32c   :  { %v1874_v20 = vpop.f32.mrf.mxu3 }
 0x32d   :  { %v2274_v30 = vmul.f32 %v2177_v59, %v2050_v13  ;;  %v1875_v61 = vadd.f32 %v1874_v20, %v4168_v33 }
 0x32f   :  { %v2321_v60 = vsel %vm2291_vm2, %v2274_v30, 0.0  ;;  %v1964_v42 = vadd.f32 %v1963_v15, %v1875_v61  ;;  %v1712_v61 = vadd.f32 %v3859_v39, %v4139_v40 }
 0x330   :  { %v2322_v51 = vadd.f32 %v2321_v60, %v2320_v58  ;;  %v2202_v58 = vpop.permute.xlu2 %2201 }
 0x331   :  { %v2019_v29 = vmul.f32 0.2, %v1964_v42 }
 0x332   :  { %v1970_v52 = vpop.f32.mrf.mxu1 }
 0x333   :  { %v2051_v8 = vmax.f32 %v1964_v42, %v2019_v29  ;;  %v1805_v42 = vpop.f32.mrf.mxu2 }
 0x334   :  { %v1876_v37 = vpop.f32.mrf.mxu3 }
 0x335   :  { %v2275_v5 = vmul.f32 %v2182_v54, %v2051_v8  ;;  %v1877_v3 = vadd.f32 %v1876_v37, %v4187_v11 }
 0x337   :  { %v2323_v12 = vsel %vm2291_vm2, %v2275_v5, 0.0  ;;  %v1966_v45 = vadd.f32 %v1965_v41, %v1877_v3 }
 0x338   :  { %v2324_v16 = vadd.f32 %v2323_v12, %v2322_v51  ;;  %v1801_v51 = vadd.f32 %v1800_v63, %v1712_v61  ;;  %v4408_v12 = vld [vmem:[#allocation10_spill] sm:$0xff] }
 0x339   :  { %v2020_v17 = vmul.f32 0.2, %v1966_v45 }
 0x33a   :  { %v1973_v47 = vpop.f32.mrf.mxu1 }
 0x33b   :  { %v2052_v33 = vmax.f32 %v1966_v45, %v2020_v17  ;;  %v4409_v45 = vld [vmem:[#allocation7_spill] sm:$0xff]  ;;  %v1807_v40 = vpop.f32.mrf.mxu2 }
 0x33c   :  { %v1879_v27 = vpop.f32.mrf.mxu3 }
 0x33d   :  { %v2276_v1 = vmul.f32 %v2187_v32, %v2052_v33  ;;  %v1880_v31 = vadd.f32 %v1879_v27, %v4199_v62 }
 0x33f   :  { %v2325_v36 = vsel %vm2291_vm2, %v2276_v1, 0.0  ;;  %v1969_v56 = vadd.f32 %v1968_v10, %v1880_v31 }
 0x340   :  { %v2326_v4 = vadd.f32 %v2325_v36, %v2324_v16  ;;  %v1714_v16 = vadd.f32 %v4409_v45, %v4408_v12 }
 0x341   :  { %v2021_v50 = vmul.f32 0.2, %v1969_v56 }
 0x342   :  { %v1975_v26 = vpop.f32.mrf.mxu1  ;;  %v1803_v32 = vadd.f32 %v1802_v49, %v1714_v16 }
 0x343   :  { %v2053_v11 = vmax.f32 %v1969_v56, %v2021_v50  ;;  %v4410_v56 = vld [vmem:[#allocation8_spill] sm:$0xff] }
 0x344   :  { %v1881_v15 = vpop.f32.mrf.mxu3 }
 0x345   :  { %v2277_v7 = vmul.f32 %v2192_v18, %v2053_v11  ;;  %v1882_v14 = vadd.f32 %v1881_v15, %v4215_v35  ;;  %v1709_v35 = vadd.f32 %v3857_v21, %v4129_v48  ;;  %v2207_v21 = vpop.permute.xlu0 %2206 }
 0x347   :  { %v2327_v25 = vsel %vm2291_vm2, %v2277_v7, 0.0  ;;  %v1971_v24 = vadd.f32 %v1970_v52, %v1882_v14  ;;  %v1798_v38 = vadd.f32 %v1797_v53, %v1709_v35  ;;  %v2217_v7 = vpop.permute.xlu2 %2216 }
 0x348   :  { %v2328_v57 = vadd.f32 %v2327_v25, %v2326_v4  ;;  %v4411_v4 = vld [vmem:[#allocation15_spill] sm:$0xff] }
 0x349   :  { %v2022_v9 = vmul.f32 0.2, %v1971_v24  ;;  %v1717_v50 = vadd.f32 %v4411_v4, %v4410_v56 }
 0x34a   :  { %v1978_v46 = vpop.f32.mrf.mxu1 }
 0x34b   :  { %v2054_v62 = vmax.f32 %v1971_v24, %v2022_v9  ;;  %v1806_v18 = vadd.f32 %v1805_v42, %v1717_v50  ;;  %v1810_v24 = vpop.f32.mrf.mxu2 }
 0x34c   :  { %v1884_v6 = vpop.f32.mrf.mxu3 }
 0x34d   :  { %v2278_v41 = vmul.f32 %v2197_v44, %v2054_v62  ;;  %v1885_v19 = vadd.f32 %v1884_v6, %v4226_v0  ;;  %v4412_v62 = vld [vmem:[#allocation6_spill] sm:$0xff]  ;;  %v4413_v6 = vld [vmem:[#allocation16_spill] sm:$0xff] }
 0x34f   :  { %v2329_v43 = vsel %vm2291_vm2, %v2278_v41, 0.0  ;;  %v1974_v22 = vadd.f32 %v1973_v47, %v1885_v19  ;;  %v2212_v47 = vpop.permute.xlu1 %2211  ;;  %v2222_v19 = vpop.permute.xlu0 %2221 }
 0x350   :  { %v2330_v2 = vadd.f32 %v2329_v43, %v2328_v57  ;;  %v2232_v16 = vpop.permute.xlu2 %2231 }
 0x351   :  { %v2023_v28 = vmul.f32 0.2, %v1974_v22 }
 0x352   :  { %v1980_v59 = vpop.f32.mrf.mxu1 }
 0x353   :  { %v2055_v55 = vmax.f32 %v1974_v22, %v2023_v28 }
 0x354   :  { %v1886_v34 = vpop.f32.mrf.mxu3 }
 0x355   :  { %v2279_v10 = vmul.f32 %v2202_v58, %v2055_v55  ;;  %v1887_v13 = vadd.f32 %v1886_v34, %v1798_v38  ;;  %v1812_v58 = vpop.f32.mrf.mxu2 }
 0x357   :  { %v2331_v20 = vsel %vm2291_vm2, %v2279_v10, 0.0  ;;  %v1976_v30 = vadd.f32 %v1975_v26, %v1887_v13  ;;  %v4414_v10 = vld [vmem:[#allocation18_spill] sm:$0xff]  ;;  %v4415_v13 = vld [vmem:[#allocation17_spill] sm:$0xff]  ;;  %v2227_v61 = vpop.permute.xlu1 %2226  ;;  %v2237_v56 = vpop.permute.xlu0 %2236 }
 0x358   :  { %v2332_v0 = vadd.f32 %v2331_v20, %v2330_v2 }
 0x359   :  { %v2024_v60 = vmul.f32 0.2, %v1976_v30 }
 0x35a   :  { %v1983_v3 = vpop.f32.mrf.mxu1 }
 0x35b   :  { %v2056_v29 = vmax.f32 %v1976_v30, %v2024_v60 }
 0x35c   :  { %v1889_v48 = vpop.f32.mrf.mxu3 }
 0x35d   :  { %v2280_v52 = vmul.f32 %v2207_v21, %v2056_v29  ;;  %v1890_v8 = vadd.f32 %v1889_v48, %v1801_v51 }
 0x35f   :  { %v2333_v54 = vsel %vm2291_vm2, %v2280_v52, 0.0  ;;  %v1979_v37 = vadd.f32 %v1978_v46, %v1890_v8  ;;  %v1719_v46 = vadd.f32 %v4413_v6, %v4412_v62  ;;  %v4416_v8 = vld [vmem:[#allocation19_spill] sm:$0xff] }
 0x360   :  { %v2334_v5 = vadd.f32 %v2333_v54, %v2332_v0  ;;  %v4417_v54 = vld [vmem:[#allocation13_spill] sm:$0xff] }
 0x361   :  { %v2025_v17 = vmul.f32 0.2, %v1979_v37  ;;  %v1808_v43 = vadd.f32 %v1807_v40, %v1719_v46  ;;  %v2242_v46 = vpop.permute.xlu1 %2241 }
 0x362   :  { %v1985_v11 = vpop.f32.mrf.mxu1 }
 0x363   :  { %v2057_v39 = vmax.f32 %v1979_v37, %v2025_v17  ;;  %v1724_v37 = vadd.f32 %v4417_v54, %v4416_v8  ;;  %v2252_v54 = vpop.permute.xlu0 %2251 }
 0x364   :  { %v1891_v33 = vpop.f32.mrf.mxu3 }
 0x365   :  { %v2281_v53 = vmul.f32 %v2212_v47, %v2057_v39  ;;  %v1892_v27 = vadd.f32 %v1891_v33, %v1803_v32  ;;  %v1813_v12 = vadd.f32 %v1812_v58, %v1724_v37 }
 0x367   :  { %v2335_v1 = vsel %vm2291_vm2, %v2281_v53, 0.0  ;;  %v1981_v31 = vadd.f32 %v1980_v59, %v1892_v27  ;;  %v1722_v59 = vadd.f32 %v4415_v13, %v4414_v10  ;;  %v4418_v27 = vld [vmem:[#allocation20_spill] sm:$0xff] }
 0x368   :  { %v2336_v36 = vadd.f32 %v2335_v1, %v2334_v5  ;;  %v4419_v1 = vld [vmem:[#allocation14_spill] sm:$0xff] }
 0x369   :  { %v2026_v26 = vmul.f32 0.2, %v1981_v31  ;;  %v1811_v30 = vadd.f32 %v1810_v24, %v1722_v59  ;;  %v4421_v24 = vld [vmem:[#allocation11_spill] sm:$0xff] }
 0x36a   :  { %v1988_v2 = vpop.f32.mrf.mxu1 }
 0x36b   :  { %v2058_v15 = vmax.f32 %v1981_v31, %v2026_v26  ;;  %v1727_v31 = vadd.f32 %v4419_v1, %v4418_v27 }
 0x36c   :  { %v1894_v14 = vpop.f32.mrf.mxu3 }
 0x36d   :  { %v2282_v63 = vmul.f32 %v2217_v7, %v2058_v15  ;;  %v1895_v25 = vadd.f32 %v1894_v14, %v1806_v18 }
 0x36f   :  { %v2337_v57 = vsel %vm2291_vm2, %v2282_v63, 0.0  ;;  %v1984_v9 = vadd.f32 %v1983_v3, %v1895_v25  ;;  %v1815_v3 = vpop.f32.mrf.mxu2  ;;  %v4420_v25 = vld [vmem:[#allocation21_spill] sm:$0xff] }
 0x370   :  { %v2338_v44 = vadd.f32 %v2337_v57, %v2336_v36  ;;  %v1816_v4 = vadd.f32 %v1815_v3, %v1727_v31  ;;  %v1729_v57 = vadd.f32 %v4421_v24, %v4420_v25 }
 0x371   :  { %v2027_v41 = vmul.f32 0.2, %v1984_v9 }
 0x372   :  { %v1990_v29 = vpop.f32.mrf.mxu1 }
 0x373   :  { %v2059_v22 = vmax.f32 %v1984_v9, %v2027_v41 }
 0x374   :  { %v1896_v49 = vpop.f32.mrf.mxu3 }
 0x375   :  { %v2283_v35 = vmul.f32 %v2222_v19, %v2059_v22  ;;  %v1897_v28 = vadd.f32 %v1896_v49, %v1808_v43 }
 0x377   :  { %v2339_v38 = vsel %vm2291_vm2, %v2283_v35, 0.0  ;;  %v1986_v55 = vadd.f32 %v1985_v11, %v1897_v28  ;;  %v1817_v26 = vpop.f32.mrf.mxu2  ;;  %v4422_v28 = vld [vmem:[#allocation22_spill] sm:$0xff] }
 0x378   :  { %v2340_v34 = vadd.f32 %v2339_v38, %v2338_v44  ;;  %v1818_v62 = vadd.f32 %v1817_v26, %v1729_v57  ;;  %v4423_v38 = vld [vmem:[#allocation12_spill] sm:$0xff] }
 0x379   :  { %v2028_v20 = vmul.f32 0.2, %v1986_v55 }
 0x37a   :  { %v1993_v53 = vpop.f32.mrf.mxu1 }
 0x37b   :  { %v2060_v0 = vmax.f32 %v1986_v55, %v2028_v20  ;;  %v1732_v55 = vadd.f32 %v4423_v38, %v4422_v28 }
 0x37c   :  { %v1899_v60 = vpop.f32.mrf.mxu3 }
 0x37d   :  { %v2284_v42 = vmul.f32 %v2227_v61, %v2060_v0  ;;  %v1900_v51 = vadd.f32 %v1899_v60, %v1811_v30 }
 0x37f   :  { %v2341_v21 = vsel %vm2291_vm2, %v2284_v42, 0.0  ;;  %v1989_v48 = vadd.f32 %v1988_v2, %v1900_v51  ;;  %v1820_v22 = vpop.f32.mrf.mxu2 }
 0x380   :  { %v2342_v52 = vadd.f32 %v2341_v21, %v2340_v34  ;;  %v2247_v34 = vpop.permute.xlu2 %2246  ;;  %v1821_v10 = vadd.f32 %v1820_v22, %v1732_v55 }
 0x381   :  { %v2029_v5 = vmul.f32 0.2, %v1989_v48 }
 0x382   :  { %v1995_v44 = vpop.f32.mrf.mxu1 }
 0x383   :  { %v2061_v45 = vmax.f32 %v1989_v48, %v2029_v5 }
 0x384   :  { %v1901_v17 = vpop.f32.mrf.mxu3 }
 0x385   :  { %v2285_v47 = vmul.f32 %v2232_v16, %v2061_v45  ;;  %v1902_v32 = vadd.f32 %v1901_v17, %v1813_v12 }
 0x387   :  { %v2343_v39 = vsel %vm2291_vm2, %v2285_v47, 0.0  ;;  %v1991_v40 = vadd.f32 %v1990_v29, %v1902_v32  ;;  %v1822_v42 = vpop.f32.mrf.mxu2  ;;  %v4424_v29 = vld [vmem:[#allocation9_spill] sm:$0xff] }
 0x388   :  { %v2344_v33 = vadd.f32 %v2343_v39, %v2342_v52  ;;  %v1734_v21 = vadd.f32 %v4424_v29, %v4195_v23  ;;  %v2257_v39 = vpop.permute.xlu1 %2256 }
 0x389   :  { %v2030_v36 = vmul.f32 0.2, %v1991_v40 }
 0x38a   :  { %v1998_v20 = vpop.f32.mrf.mxu1  ;;  %v1823_v52 = vadd.f32 %v1822_v42, %v1734_v21 }
 0x38b   :  { %v2062_v50 = vmax.f32 %v1991_v40, %v2030_v36  ;;  %v2365_v36 = vpop.permute.xlu2 %2364 }
 0x38c   :  { %v1904_v11 = vpop.f32.mrf.mxu3 }
 0x38d   :  { %v2286_v18 = vmul.f32 %v2237_v56, %v2062_v50  ;;  %v1905_v15 = vadd.f32 %v1904_v11, %v1816_v4  ;;  %v2367_v4 = vperm.slane %v2365_v36, 0 }
 0x38f   :  { %v2345_v7 = vsel %vm2291_vm2, %v2286_v18, 0.0  ;;  %v1994_v14 = vadd.f32 %v1993_v53, %v1905_v15 }
 0x390   :  { %v2346_v63 = vadd.f32 %v2345_v7, %v2344_v33 }
 0x391   :  { %v2031_v9 = vmul.f32 0.2, %v1994_v14 }
 0x392   :  { %v2000_v12 = vpop.f32.mrf.mxu1 }
 0x393   :  { %v2063_v6 = vmax.f32 %v1994_v14, %v2031_v9 }
 0x394   :  { %v1906_v41 = vpop.f32.mrf.mxu3 }
 0x395   :  { %v2287_v19 = vmul.f32 %v2242_v46, %v2063_v6  ;;  %v1907_v43 = vadd.f32 %v1906_v41, %v1818_v62 }
 0x397   :  { %v2347_v49 = vsel %vm2291_vm2, %v2287_v19, 0.0  ;;  %v1996_v2 = vadd.f32 %v1995_v44, %v1907_v43 }
 0x398   :  { %v2348_v35 = vadd.f32 %v2347_v49, %v2346_v63 }
 0x399   :  { %v2032_v58 = vmul.f32 0.2, %v1996_v2 }
 0x39b   :  { %v2064_v13 = vmax.f32 %v1996_v2, %v2032_v58 }
 0x39c   :  { %v1909_v59 = vpop.f32.mrf.mxu3 }
 0x39d   :  { %v2288_v30 = vmul.f32 %v2247_v34, %v2064_v13  ;;  %v1910_v0 = vadd.f32 %v1909_v59, %v1821_v10 }
 0x39f   :  { %v2349_v61 = vsel %vm2291_vm2, %v2288_v30, 0.0  ;;  %v1999_v60 = vadd.f32 %v1998_v20, %v1910_v0 }
 0x3a0   :  { %v2350_v51 = vadd.f32 %v2349_v61, %v2348_v35 }
 0x3a1   :  { %v2033_v48 = vmul.f32 0.2, %v1999_v60 }
 0x3a3   :  { %v2065_v8 = vmax.f32 %v1999_v60, %v2033_v48 }
 0x3a4   :  { %v1911_v37 = vpop.f32.mrf.mxu3 }
 0x3a5   :  { %v2289_v5 = vmul.f32 %v2252_v54, %v2065_v8  ;;  %v1912_v3 = vadd.f32 %v1911_v37, %v1823_v52 }
 0x3a7   :  { %v2351_v45 = vsel %vm2291_vm2, %v2289_v5, 0.0  ;;  %v2001_v16 = vadd.f32 %v2000_v12, %v1912_v3 }
 0x3a8   :  { %v2352_v17 = vadd.f32 %v2351_v45, %v2350_v51 }
 0x3a9   :  { %v2034_v47 = vmul.f32 0.2, %v2001_v16 }
 0x3ab   :  { %v2066_v32 = vmax.f32 %v2001_v16, %v2034_v47 }
 0x3ad   :  { %v2290_v40 = vmul.f32 %v2257_v39, %v2066_v32 }
 0x3af   :  { %v2353_v33 = vsel %vm2291_vm2, %v2290_v40, 0.0 }
 0x3b0   :  { %v2354_v53 = vadd.f32 %v2353_v33, %v2352_v17 }
 0x3b2   :  { %v2355_v23 = vrot.slane %v2354_v53, 4 }
 0x3b4   :  { %v2356_v27 = vadd.f32 %v2355_v23, %v2354_v53 }
 0x3b6   :  { %v2357_v1 = vrot.slane %v2356_v27, 2 }
 0x3b8   :  { %v2358_v31 = vadd.f32 %v2357_v1, %v2356_v27 }
 0x3ba   :  { %v2359_v56 = vrot.slane %v2358_v31, 1 }
 0x3bc   :  { %v2360_v50 = vadd.f32 %v2359_v56, %v2358_v31 }
 0x3be   :  { %v2368_v26 = vadd.f32 %v2367_v4, %v2360_v50 }
 0x3c0   :  { %v2369_v11 = vsub.f32 0.0, %v2368_v26 }
 0x3c2   :  { %v2370_v18 = vmul.f32 1.442695, %v2369_v11 }
 0x3c4   :  { %2918 = vpow2.f32 %v2370_v18 }
 0x3ca   :  { %v2919_v15 = vpop.eup %2918 }
 0x3cb   :  { %v2372_v7 = vadd.f32 1.0, %v2919_v15 }
 0x3cd   :  { %2920 = vrcp.f32 %v2372_v7 }
 0x3d3   :  { %v2921_v14 = vpop.eup %2920 }
 0x3d4   :  { %2375 = vst.msk [vmem:[#allocation3] sm:$0x1] %vm2374_vm3, %v2921_v14 }
 0x3d5   :  { %2386 = dma.vmem_to_hbm [thread:$0]  %s2382_s15, 16, %s2384_s1, [#allocation4]  }
 0x3d6   :  { %2946 = dma.done.wait [#allocation4], 16  }
 0x3d7   :  { %2947 = vsyncadd [#allocation4], 4294967280 }
 0x3d8   :  { %2391 = vsyncpa [#allocation4], 1 }

</bundles_post_ra>
